<compile_context>
chip_gen: v7x
topology: tpu7x:2x2x1
jax: 0.10.0
libtpu: 0.0.40
codegen_flags: <defaults>
</compile_context>

<pallas_src>
import functools

import jax
import jax.numpy as jnp
from jax import lax
from jax.experimental import pallas as pl
from jax.experimental.pallas import tpu as pltpu

# ---- static configuration (mirrors Model.__init__ at small test sizes) ----
B, S, H, VOCAB = 2, 8, 32, 50          # batch, source seq, hidden_size, vocab
CODE_LENGTH, CODE_NUMBER = 3, 10       # code_length, code_number
SK_EPSILON, SK_ITERS = 0.03, 100       # sk_epsilon, sk_iters
USE_CONSTRAINT = True                  # Model.__init__(use_constraint=...)

H_PAD = 128                            # hidden axis padded to a full lane width
K_PAD = 128                            # code axis padded to a full lane width
LANES = 128
SK_UNROLL = 4


def _full_spec(shape):
    """BlockSpec covering the whole array (grid=(1,))."""
    nd = len(shape)
    return pl.BlockSpec(shape, lambda i, _nd=nd: (0,) * _nd)


# --------------------------------------------------------------------------
# In-kernel quantize(): center_distance_for_constraint + sinkhorn_raw
# --------------------------------------------------------------------------
def _total_sum(x):
    # Mirrors the reference's nested sums: sum over dim 0 then dim 1 -> (1, 1).
    return jnp.sum(jnp.sum(x, axis=0, keepdims=True), axis=1, keepdims=True)


def _sinkhorn_plan(prob):
    """center_distance_for_constraint + sinkhorn_raw (single device, no all_reduce).

    `prob` is (B, K); the returned plan corresponds to the reference's Q.t().
    """
    distances = -prob
    max_d = jnp.max(distances)
    min_d = jnp.min(distances)
    middle = (max_d + min_d) * 0.5
    amplitude = max_d - middle + 1e-5
    centered = (distances - middle) / amplitude

    out = -centered
    q = jnp.exp(out * (1.0 / SK_EPSILON))            # (B, K) == reference Q.T
    inv_k = 1.0 / float(CODE_NUMBER)
    inv_b = 1.0 / float(B)

    q = q * pl.reciprocal(jnp.maximum(_total_sum(q), 1e-5), approx=True)

    def one_iter(q):
        # reference "rows" of Q (code axis) == columns here; sum over the batch axis
        col = jnp.maximum(jnp.sum(q, axis=0, keepdims=True), 1e-5)       # (1, K)
        t = q * (pl.reciprocal(col, approx=True) * inv_k)                # Q/=rows; Q/=K
        # reference divides by the TOTAL sum here (nested sums -> scalar), then by B
        tot = jnp.maximum(_total_sum(t), 1e-5)                           # (1, 1)
        return t * (pl.reciprocal(tot, approx=True) * inv_b)

    def unrolled_body(_, q):
        for _u in range(SK_UNROLL):
            q = one_iter(q)
        return q

    q = lax.fori_loop(0, SK_ITERS // SK_UNROLL, unrolled_body, q)
    for _ in range(SK_ITERS % SK_UNROLL):
        q = one_iter(q)

    return q * float(B)                               # reference: Q *= B; return Q.t()


# --------------------------------------------------------------------------
# Fully fused kernel: embeddings + stand-in encoder/decoder + centroid logits
# + quantize() + embed_decode()
# --------------------------------------------------------------------------
def _fused_forward_kernel(ids_ref, mask_ref, dec_ids_ref, tok_emb_ref,
                          code_emb_ref, wdec_ref, bdec_ref, cent_ref,
                          cent_last_ref,
                          dec_out_ref, logits_ref, codes_ref, quant_ref,
                          *, use_constraint: bool):
    # ---- stand-in encoder: one-hot token embedding + masked mean pooling ----
    ids = ids_ref[...]                                       # (B, S, 1) int32
    mask = mask_ref[...]                                     # (B, S, 1) f32
    vocab_iota = lax.broadcasted_iota(jnp.int32, (B, S, VOCAB), 2)
    tok_oh = jnp.where(ids == vocab_iota, 1.0, 0.0)          # (B, S, V) one-hot
    enc = jnp.einsum("bsv,bvh->bsh", tok_oh, tok_emb_ref[...],
                     preferred_element_type=jnp.float32)     # (B, S, H)
    msum = jnp.sum(enc * mask, axis=1)                       # (B, H)
    denom = jnp.maximum(jnp.sum(mask, axis=1), 1.0)          # (B, 1)
    pooled = msum / denom                                    # (B, H)

    # ---- decoder-input code embeddings: ONE batched one-hot matmul over L ----
    dec_ids = dec_ids_ref[...]                               # (L, B, 1) int32
    code_iota = lax.broadcasted_iota(
        jnp.int32, (CODE_LENGTH, B, CODE_NUMBER), 2)
    code_oh = jnp.where(dec_ids == code_iota, 1.0, 0.0)      # (L, B, K)
    dec_emb = jnp.einsum("lbk,lkh->lbh", code_oh, code_emb_ref[...],
                         preferred_element_type=jnp.float32)  # (L, B, H)

    # ---- stand-in decoder: ONE batched tanh projection for all L positions ----
    x = dec_emb + pooled[None, :, :]                         # (L, B, H)
    h = jnp.tanh(
        jnp.einsum("lbh,lhp->lbp", x, wdec_ref[...],
                   preferred_element_type=jnp.float32)
        + bdec_ref[...])                                     # (L, B, H_PAD)
    dec_out_ref[...] = h                                     # lane-dense store

    # ---- per-position centroid logits: ONE batched MXU matmul ----
    logits = jnp.einsum("lbh,lhk->lbk", h, cent_ref[...],
                        preferred_element_type=jnp.float32)  # (L, B, K_PAD)
    logits_ref[...] = logits                                 # lane-dense store

    # ---- quantize() fused in-kernel on the last position ----
    prob = logits[CODE_LENGTH - 1][:, :CODE_NUMBER]          # (B, K) real cols

    if use_constraint:
        score = _sinkhorn_plan(prob)                         # argmax(Q, dim=-1)
    else:
        score = prob                                         # argmin(-prob) == argmax(prob)

    # first-index argmax (matches torch tie-breaking); avoid 1-D iota on TPU
    mx = jnp.max(score, axis=-1, keepdims=True)
    idx = lax.broadcasted_iota(jnp.int32, score.shape, 1)
    cand = jnp.where(score == mx, idx, jnp.int32(CODE_NUMBER))
    code = jnp.min(cand, axis=-1, keepdims=True)             # (B, 1)
    codes_ref[...] = jnp.broadcast_to(code, (B, LANES))      # lane-dense codes

    # ---- embed_decode() fused: one-hot(codes) @ centroids[-1] ----
    last_iota = lax.broadcasted_iota(jnp.int32, (B, CODE_NUMBER), 1)
    code_oh_last = jnp.where(code == last_iota, 1.0, 0.0)    # (B, K)
    quant_ref[...] = jnp.dot(code_oh_last, cent_last_ref[...],
                             preferred_element_type=jnp.float32)  # (B, H_PAD)


@functools.lru_cache(maxsize=2)
def _get_forward_fn(use_constraint: bool):
    kernel = functools.partial(_fused_forward_kernel, use_constraint=use_constraint)
    call = pl.pallas_call(
        kernel,
        out_shape=(
            jax.ShapeDtypeStruct((CODE_LENGTH, B, H_PAD), jnp.float32),
            jax.ShapeDtypeStruct((CODE_LENGTH, B, K_PAD), jnp.float32),
            jax.ShapeDtypeStruct((B, LANES), jnp.int32),
            jax.ShapeDtypeStruct((B, H_PAD), jnp.float32),
        ),
        grid=(1,),
        in_specs=[
            _full_spec((B, S, 1)),                    # input ids (expanded)
            _full_spec((B, S, 1)),                    # attention mask (expanded)
            _full_spec((CODE_LENGTH, B, 1)),          # decoder input ids (L-major)
            _full_spec((B, VOCAB, H)),                # token embedding (pre-bcast)
            _full_spec((CODE_LENGTH, CODE_NUMBER, H)),  # code embedding tables
            _full_spec((CODE_LENGTH, H, H_PAD)),      # decoder weight (padded)
            _full_spec((1, H_PAD)),                   # decoder bias (padded)
            _full_spec((CODE_LENGTH, H_PAD, K_PAD)),  # centroids (pre-T, padded)
            _full_spec((CODE_NUMBER, H_PAD)),         # centroids[-1] (padded)
        ],
        out_specs=(
            _full_spec((CODE_LENGTH, B, H_PAD)),
            _full_spec((CODE_LENGTH, B, K_PAD)),
            _full_spec((B, LANES)),
            _full_spec((B, H_PAD)),
        ),
        compiler_params=pltpu.CompilerParams(dimension_semantics=("arbitrary",)),
    )

    def fn(input_ids, attention_mask, decoder_input_ids,
           tok_emb_b, code_emb, wdec_b, bdec_pad, cent_pad, cent_last_pad):
        # layout plumbing fused into the same XLA executable as the kernel
        ids3 = input_ids.astype(jnp.int32)[:, :, None]                     # (B,S,1)
        mask3 = attention_mask.astype(jnp.float32)[:, :, None]             # (B,S,1)
        dec3 = jnp.transpose(decoder_input_ids.astype(jnp.int32),
                             (1, 0))[:, :, None]                           # (L,B,1)

        dec_out_p, logits_p, codes_p, quant_p = call(
            ids3, mask3, dec3, tok_emb_b, code_emb, wdec_b, bdec_pad,
            cent_pad, cent_last_pad)

        decoder_outputs = jnp.transpose(dec_out_p, (1, 0, 2))[:, :, :H]         # (B,L,H)
        code_logits = jnp.transpose(logits_p, (1, 0, 2))[:, :, :CODE_NUMBER]    # (B,L,K)
        all_dense_embed = decoder_outputs.reshape(decoder_outputs.shape[0], -1)  # (B,L*H)
        dense_embed = decoder_outputs[:, -1]                                    # (B,H)
        probability = code_logits[:, -1]                                        # (B,K)
        discrete_codes = codes_p[:, 0]                                          # (B,)
        quant_embeds = quant_p[:, :H]                                           # (B,H)
        return (code_logits, all_dense_embed, dense_embed, probability,
                discrete_codes, quant_embeds)

    return jax.jit(fn)


# --------------------------------------------------------------------------
# Parameter init (deterministic, shapes from Model.__init__)
# --------------------------------------------------------------------------
def init_params(key):
    k_tok, k_code, k_cent, k_w, k_b = jax.random.split(key, 5)
    tok_emb = 0.02 * jax.random.normal(k_tok, (VOCAB, H), jnp.float32)
    code_emb = 0.02 * jax.random.normal(
        k_code, (CODE_LENGTH, CODE_NUMBER, H), jnp.float32)
    centroids = 0.1 * jax.random.normal(
        k_cent, (CODE_LENGTH, CODE_NUMBER, H), jnp.float32)
    wdec = 0.1 * jax.random.normal(k_w, (H, H), jnp.float32)
    bdec = 0.01 * jax.random.normal(k_b, (1, H), jnp.float32)

    # Pre-padded / pre-transposed / pre-broadcast copies, built ONCE.
    tok_emb_b = jnp.broadcast_to(tok_emb[None], (B, VOCAB, H)).astype(jnp.float32)
    wdec_pad = jnp.zeros((H, H_PAD), jnp.float32).at[:, :H].set(wdec)
    wdec_b = jnp.broadcast_to(wdec_pad[None], (CODE_LENGTH, H, H_PAD))
    bdec_pad = jnp.zeros((1, H_PAD), jnp.float32).at[:, :H].set(bdec)
    cent_pad = (jnp.zeros((CODE_LENGTH, H_PAD, K_PAD), jnp.float32)
                .at[:, :H, :CODE_NUMBER]
                .set(jnp.transpose(centroids, (0, 2, 1))))
    cent_last_pad = (jnp.zeros((CODE_NUMBER, H_PAD), jnp.float32)
                     .at[:, :H].set(centroids[-1]))

    return {
        "tok_emb": tok_emb,            # stand-in token embedding
        "code_emb": code_emb,          # nn.ModuleList([nn.Embedding(K, H)] * L)
        "centroids": centroids,        # nn.ModuleList([nn.Linear(H, K, bias=False)] * L)
        "wdec": wdec, "bdec": bdec,    # stand-in decoder projection
        "tok_emb_b": tok_emb_b, "wdec_b": wdec_b, "bdec_pad": bdec_pad,
        "cent_pad": cent_pad, "cent_last_pad": cent_last_pad,
    }


# --------------------------------------------------------------------------
# Model.forward equivalent
# --------------------------------------------------------------------------
def forward(params, input_ids, attention_mask, decoder_input_ids=None,
            aux_ids=None, return_quantized_embedding=False, use_constraint=None):
    bsz = input_ids.shape[0]
    uc = USE_CONSTRAINT if use_constraint is None else bool(use_constraint)
    if decoder_input_ids is None:
        decoder_input_ids = jnp.zeros((bsz, CODE_LENGTH), jnp.int32)

    fn = _get_forward_fn(uc)
    (code_logits, all_dense_embed, dense_embed, probability,
     discrete_codes, quant_embeds_default) = fn(
        input_ids, attention_mask, decoder_input_ids,
        params["tok_emb_b"], params["code_emb"], params["wdec_b"],
        params["bdec_pad"], params["cent_pad"], params["cent_last_pad"])

    if not return_quantized_embedding:
        quantized_embeds = None
    elif aux_ids is None:
        quantized_embeds = quant_embeds_default          # computed in-kernel
    else:
        quantized_embeds = jnp.take(params["centroids"][-1], aux_ids, axis=0)

    if CODE_LENGTH == 1:
        return_code_logits = None
    elif CODE_LENGTH == 3:
        return_code_logits = code_logits
    else:
        return_code_logits = code_logits[:, :-1]

    return {
        "logits": code_logits,
        "all_dense_embed": all_dense_embed,
        "continuous_embeds": dense_embed,
        "quantized_embeds": quantized_embeds,
        "discrete_codes": discrete_codes,
        "probability": probability,
        "code_logits": return_code_logits,
    }


if __name__ == "__main__":
    key = jax.random.PRNGKey(0)
    k_params, k_ids = jax.random.split(key)
    params = init_params(k_params)

    input_ids = jax.random.randint(k_ids, (B, S), 0, VOCAB, dtype=jnp.int32)
    attention_mask = jnp.ones((B, S), jnp.int32)

    out = forward(params, input_ids, attention_mask,
                  use_constraint=True, return_quantized_embedding=True)
    out = jax.block_until_ready(out)

    # light sanity checks on shapes / values
    assert out["logits"].shape == (B, CODE_LENGTH, CODE_NUMBER)
    assert out["all_dense_embed"].shape == (B, CODE_LENGTH * H)
    assert out["continuous_embeds"].shape == (B, H)
    assert out["probability"].shape == (B, CODE_NUMBER)
    assert out["discrete_codes"].shape == (B,)
    assert out["quantized_embeds"].shape == (B, H)
    assert bool(jnp.all(out["discrete_codes"] >= 0))
    assert bool(jnp.all(out["discrete_codes"] < CODE_NUMBER))
    assert bool(jnp.all(jnp.isfinite(out["logits"])))

    # in-kernel embed_decode must match a plain gather on the centroid table
    ref_quant = jnp.take(params["centroids"][-1], out["discrete_codes"], axis=0)
    assert bool(jnp.allclose(out["quantized_embeds"], ref_quant, atol=1e-5))

    print("KERNEL_OK")
</pallas_src>

<mosaic_0001>
module attributes {stable_mosaic.version = 11 : i64} {
  func.func @_fused_forward_kernel(%arg0: i32, %arg1: memref<2x8x1xi32, #tpu.memory_space<vmem>>, %arg2: memref<2x8x1xf32, #tpu.memory_space<vmem>>, %arg3: memref<3x2x1xi32, #tpu.memory_space<vmem>>, %arg4: memref<2x50x32xf32, #tpu.memory_space<vmem>>, %arg5: memref<3x10x32xf32, #tpu.memory_space<vmem>>, %arg6: memref<3x32x128xf32, #tpu.memory_space<vmem>>, %arg7: memref<1x128xf32, #tpu.memory_space<vmem>>, %arg8: memref<3x128x128xf32, #tpu.memory_space<vmem>>, %arg9: memref<10x128xf32, #tpu.memory_space<vmem>>, %arg10: memref<3x2x128xf32, #tpu.memory_space<vmem>>, %arg11: memref<3x2x128xf32, #tpu.memory_space<vmem>>, %arg12: memref<2x128xi32, #tpu.memory_space<vmem>>, %arg13: memref<2x128xf32, #tpu.memory_space<vmem>>) attributes {dimension_semantics = [#tpu.dimension_semantics<arbitrary>], iteration_bounds = array<i64: 1>, scalar_prefetch = 0 : i64, scratch_operands = 0 : i64, tpu.core_type = #tpu.core_type<tc>, window_params = [{pipeline_mode = #tpu.pipeline_mode<synchronous>, transform_indices = @transform_0, window_bounds = array<i64: 2, 8, 1>}, {pipeline_mode = #tpu.pipeline_mode<synchronous>, transform_indices = @transform_1, window_bounds = array<i64: 2, 8, 1>}, {pipeline_mode = #tpu.pipeline_mode<synchronous>, transform_indices = @transform_2, window_bounds = array<i64: 3, 2, 1>}, {pipeline_mode = #tpu.pipeline_mode<synchronous>, transform_indices = @transform_3, window_bounds = array<i64: 2, 50, 32>}, {pipeline_mode = #tpu.pipeline_mode<synchronous>, transform_indices = @transform_4, window_bounds = array<i64: 3, 10, 32>}, {pipeline_mode = #tpu.pipeline_mode<synchronous>, transform_indices = @transform_5, window_bounds = array<i64: 3, 32, 128>}, {pipeline_mode = #tpu.pipeline_mode<synchronous>, transform_indices = @transform_6, window_bounds = array<i64: 1, 128>}, {pipeline_mode = #tpu.pipeline_mode<synchronous>, transform_indices = @transform_7, window_bounds = array<i64: 3, 128, 128>}, {pipeline_mode = #tpu.pipeline_mode<synchronous>, transform_indices = @transform_8, window_bounds = array<i64: 10, 128>}, {pipeline_mode = #tpu.pipeline_mode<synchronous>, transform_indices = @transform_9, window_bounds = array<i64: 3, 2, 128>}, {pipeline_mode = #tpu.pipeline_mode<synchronous>, transform_indices = @transform_10, window_bounds = array<i64: 3, 2, 128>}, {pipeline_mode = #tpu.pipeline_mode<synchronous>, transform_indices = @transform_11, window_bounds = array<i64: 2, 128>}, {pipeline_mode = #tpu.pipeline_mode<synchronous>, transform_indices = @transform_12, window_bounds = array<i64: 2, 128>}]} {
    %c0 = arith.constant 0 : index
    %c0_0 = arith.constant 0 : index
    %c0_1 = arith.constant 0 : index
    %0 = vector.load %arg1[%c0, %c0_0, %c0_1] : memref<2x8x1xi32, #tpu.memory_space<vmem>>, vector<2x8x1xi32>
    %c0_2 = arith.constant 0 : index
    %c0_3 = arith.constant 0 : index
    %c0_4 = arith.constant 0 : index
    %1 = vector.load %arg2[%c0_2, %c0_3, %c0_4] : memref<2x8x1xf32, #tpu.memory_space<vmem>>, vector<2x8x1xf32>
    %2 = tpu.iota {dimensions = array<i32: 2>} : vector<2x8x50xi32>
    %3 = vector.broadcast %0 : vector<2x8x1xi32> to vector<2x8x50xi32>
    %4 = arith.cmpi eq, %3, %2 : vector<2x8x50xi32>
    %cst = arith.constant 1.000000e+00 : f32
    %cst_5 = arith.constant 0.000000e+00 : f32
    %5 = vector.broadcast %cst : f32 to vector<2x8x50xf32>
    %6 = vector.broadcast %cst_5 : f32 to vector<2x8x50xf32>
    %7 = arith.select %4, %5, %6 : vector<2x8x50xi1>, vector<2x8x50xf32>
    %c0_6 = arith.constant 0 : index
    %c0_7 = arith.constant 0 : index
    %c0_8 = arith.constant 0 : index
    %8 = vector.load %arg4[%c0_6, %c0_7, %c0_8] : memref<2x50x32xf32, #tpu.memory_space<vmem>>, vector<2x50x32xf32>
    "tpu.trace_start"() <{level = 10 : i32, message = "bsv,bvh->bsh"}> : () -> ()
    %cst_9 = arith.constant dense<0.000000e+00> : vector<2x8x32xf32>
    %9 = tpu.matmul %7, %8, %cst_9 {dimension_numbers = #tpu.dot_dimension_numbers<[2], [1], [1], [2], [0, 0, 0, 1, 1, 2], [0], [0]>} : vector<2x8x50xf32>, vector<2x50x32xf32>, vector<2x8x32xf32> -> vector<2x8x32xf32>
    "tpu.trace_stop"() : () -> ()
    %10 = vector.broadcast %1 : vector<2x8x1xf32> to vector<2x8x32xf32>
    %11 = arith.mulf %9, %10 : vector<2x8x32xf32>
    %cst_10 = arith.constant dense<0.000000e+00> : vector<2x32xf32>
    %12 = vector.multi_reduction <add>, %11, %cst_10 [1] : vector<2x8x32xf32> to vector<2x32xf32>
    %cst_11 = arith.constant dense<0.000000e+00> : vector<2x1xf32>
    %13 = vector.multi_reduction <add>, %1, %cst_11 [1] : vector<2x8x1xf32> to vector<2x1xf32>
    %cst_12 = arith.constant 1.000000e+00 : f32
    %14 = vector.broadcast %cst_12 : f32 to vector<2x1xf32>
    %15 = arith.maximumf %13, %14 : vector<2x1xf32>
    %16 = vector.broadcast %15 : vector<2x1xf32> to vector<2x32xf32>
    %17 = arith.divf %12, %16 : vector<2x32xf32>
    %c0_13 = arith.constant 0 : index
    %c0_14 = arith.constant 0 : index
    %c0_15 = arith.constant 0 : index
    %18 = vector.load %arg3[%c0_13, %c0_14, %c0_15] : memref<3x2x1xi32, #tpu.memory_space<vmem>>, vector<3x2x1xi32>
    %19 = tpu.iota {dimensions = array<i32: 2>} : vector<3x2x10xi32>
    %20 = vector.broadcast %18 : vector<3x2x1xi32> to vector<3x2x10xi32>
    %21 = arith.cmpi eq, %20, %19 : vector<3x2x10xi32>
    %cst_16 = arith.constant 1.000000e+00 : f32
    %cst_17 = arith.constant 0.000000e+00 : f32
    %22 = vector.broadcast %cst_16 : f32 to vector<3x2x10xf32>
    %23 = vector.broadcast %cst_17 : f32 to vector<3x2x10xf32>
    %24 = arith.select %21, %22, %23 : vector<3x2x10xi1>, vector<3x2x10xf32>
    %c0_18 = arith.constant 0 : index
    %c0_19 = arith.constant 0 : index
    %c0_20 = arith.constant 0 : index
    %25 = vector.load %arg5[%c0_18, %c0_19, %c0_20] : memref<3x10x32xf32, #tpu.memory_space<vmem>>, vector<3x10x32xf32>
    "tpu.trace_start"() <{level = 10 : i32, message = "lbk,lkh->lbh"}> : () -> ()
    %cst_21 = arith.constant dense<0.000000e+00> : vector<3x2x32xf32>
    %26 = tpu.matmul %24, %25, %cst_21 {dimension_numbers = #tpu.dot_dimension_numbers<[2], [1], [1], [2], [0, 0, 0, 1, 1, 2], [0], [0]>} : vector<3x2x10xf32>, vector<3x10x32xf32>, vector<3x2x32xf32> -> vector<3x2x32xf32>
    "tpu.trace_stop"() : () -> ()
    %27 = vector.shape_cast %17 : vector<2x32xf32> to vector<1x2x32xf32>
    %28 = vector.broadcast %27 : vector<1x2x32xf32> to vector<3x2x32xf32>
    %29 = arith.addf %26, %28 : vector<3x2x32xf32>
    %c0_22 = arith.constant 0 : index
    %c0_23 = arith.constant 0 : index
    %c0_24 = arith.constant 0 : index
    %30 = vector.load %arg6[%c0_22, %c0_23, %c0_24] : memref<3x32x128xf32, #tpu.memory_space<vmem>>, vector<3x32x128xf32>
    "tpu.trace_start"() <{level = 10 : i32, message = "lbh,lhp->lbp"}> : () -> ()
    %cst_25 = arith.constant dense<0.000000e+00> : vector<3x2x128xf32>
    %31 = tpu.matmul %29, %30, %cst_25 {dimension_numbers = #tpu.dot_dimension_numbers<[2], [1], [1], [2], [0, 0, 0, 1, 1, 2], [0], [0]>} : vector<3x2x32xf32>, vector<3x32x128xf32>, vector<3x2x128xf32> -> vector<3x2x128xf32>
    "tpu.trace_stop"() : () -> ()
    %c0_26 = arith.constant 0 : index
    %c0_27 = arith.constant 0 : index
    %32 = vector.load %arg7[%c0_26, %c0_27] : memref<1x128xf32, #tpu.memory_space<vmem>>, vector<1x128xf32>
    %33 = vector.shape_cast %32 : vector<1x128xf32> to vector<1x1x128xf32>
    %34 = vector.broadcast %33 : vector<1x1x128xf32> to vector<3x2x128xf32>
    %35 = arith.addf %31, %34 : vector<3x2x128xf32>
    %36 = math.tanh %35 : vector<3x2x128xf32>
    %c0_28 = arith.constant 0 : index
    %c0_29 = arith.constant 0 : index
    %c0_30 = arith.constant 0 : index
    %37 = vector.load %arg10[%c0_28, %c0_29, %c0_30] : memref<3x2x128xf32, #tpu.memory_space<vmem>>, vector<3x2x128xf32>
    tpu.vector_store %arg10[%c0_28, %c0_29, %c0_30], %36 {strides = array<i32>} : memref<3x2x128xf32, #tpu.memory_space<vmem>>, vector<3x2x128xf32>,
    %c0_31 = arith.constant 0 : index
    %c0_32 = arith.constant 0 : index
    %c0_33 = arith.constant 0 : index
    %38 = vector.load %arg8[%c0_31, %c0_32, %c0_33] : memref<3x128x128xf32, #tpu.memory_space<vmem>>, vector<3x128x128xf32>
    "tpu.trace_start"() <{level = 10 : i32, message = "lbh,lhk->lbk"}> : () -> ()
    %cst_34 = arith.constant dense<0.000000e+00> : vector<3x2x128xf32>
    %39 = tpu.matmul %36, %38, %cst_34 {dimension_numbers = #tpu.dot_dimension_numbers<[2], [1], [1], [2], [0, 0, 0, 1, 1, 2], [0], [0]>} : vector<3x2x128xf32>, vector<3x128x128xf32>, vector<3x2x128xf32> -> vector<3x2x128xf32>
    "tpu.trace_stop"() : () -> ()
    %c0_35 = arith.constant 0 : index
    %c0_36 = arith.constant 0 : index
    %c0_37 = arith.constant 0 : index
    %40 = vector.load %arg11[%c0_35, %c0_36, %c0_37] : memref<3x2x128xf32, #tpu.memory_space<vmem>>, vector<3x2x128xf32>
    tpu.vector_store %arg11[%c0_35, %c0_36, %c0_37], %39 {strides = array<i32>} : memref<3x2x128xf32, #tpu.memory_space<vmem>>, vector<3x2x128xf32>,
    %41 = vector.extract_strided_slice %39 {offsets = [2, 0, 0], sizes = [1, 2, 128], strides = [1, 1, 1]} : vector<3x2x128xf32> to vector<1x2x128xf32>
    %42 = vector.shape_cast %41 : vector<1x2x128xf32> to vector<2x128xf32>
    %43 = vector.extract_strided_slice %42 {offsets = [0, 0], sizes = [2, 10], strides = [1, 1]} : vector<2x128xf32> to vector<2x10xf32>
    %cst_38 = arith.constant 0.000000e+00 : f32
    %44 = vector.broadcast %cst_38 : f32 to vector<2x10xf32>
    %45 = arith.subf %44, %43 : vector<2x10xf32>
    %46 = vector.shape_cast %45 : vector<2x10xf32> to vector<1x2x10xf32>
    %cst_39 = arith.constant dense<0xFF800000> : vector<1xf32>
    %47 = vector.multi_reduction <maximumf>, %46, %cst_39 [1, 2] : vector<1x2x10xf32> to vector<1xf32>
    %48 = vector.shape_cast %47 : vector<1xf32> to vector<1x1x1xf32>
    %49 = vector.extract %48[0, 0, 0] : f32 from vector<1x1x1xf32>
    %50 = vector.shape_cast %45 : vector<2x10xf32> to vector<1x2x10xf32>
    %cst_40 = arith.constant dense<0x7F800000> : vector<1xf32>
    %51 = vector.multi_reduction <minimumf>, %50, %cst_40 [1, 2] : vector<1x2x10xf32> to vector<1xf32>
    %52 = vector.shape_cast %51 : vector<1xf32> to vector<1x1x1xf32>
    %53 = vector.extract %52[0, 0, 0] : f32 from vector<1x1x1xf32>
    %54 = arith.addf %49, %53 : f32
    %cst_41 = arith.constant 5.000000e-01 : f32
    %55 = arith.mulf %54, %cst_41 : f32
    %56 = arith.subf %49, %55 : f32
    %cst_42 = arith.constant 9.99999974E-6 : f32
    %57 = arith.addf %56, %cst_42 : f32
    %58 = vector.broadcast %55 : f32 to vector<2x10xf32>
    %59 = arith.subf %45, %58 : vector<2x10xf32>
    %60 = vector.broadcast %57 : f32 to vector<2x10xf32>
    %61 = arith.divf %59, %60 : vector<2x10xf32>
    %cst_43 = arith.constant 0.000000e+00 : f32
    %62 = vector.broadcast %cst_43 : f32 to vector<2x10xf32>
    %63 = arith.subf %62, %61 : vector<2x10xf32>
    %cst_44 = arith.constant 33.3333321 : f32
    %64 = vector.broadcast %cst_44 : f32 to vector<2x10xf32>
    %65 = arith.mulf %63, %64 : vector<2x10xf32>
    %66 = math.exp %65 : vector<2x10xf32>
    %cst_45 = arith.constant dense<0.000000e+00> : vector<10xf32>
    %67 = vector.multi_reduction <add>, %66, %cst_45 [0] : vector<2x10xf32> to vector<10xf32>
    %68 = vector.shape_cast %67 : vector<10xf32> to vector<1x10xf32>
    %cst_46 = arith.constant dense<0.000000e+00> : vector<1xf32>
    %69 = vector.multi_reduction <add>, %68, %cst_46 [1] : vector<1x10xf32> to vector<1xf32>
    %70 = vector.shape_cast %69 : vector<1xf32> to vector<1x1xf32>
    %cst_47 = arith.constant 9.99999974E-6 : f32
    %71 = vector.broadcast %cst_47 : f32 to vector<1x1xf32>
    %72 = arith.maximumf %70, %71 : vector<1x1xf32>
    %73 = tpu.reciprocal %72 {approx = true} : vector<1x1xf32> -> vector<1x1xf32>
    %74 = vector.broadcast %73 : vector<1x1xf32> to vector<2x10xf32>
    %75 = arith.mulf %66, %74 : vector<2x10xf32>
    %c0_i32 = arith.constant 0 : i32
    %c25_i32 = arith.constant 25 : i32
    %76 = arith.addi %c0_i32, %c25_i32 : i32
    %c1_i32 = arith.constant 1 : i32
    %77 = scf.for %arg14 = %c0_i32 to %76 step %c1_i32 iter_args(%arg15 = %75) -> (vector<2x10xf32>)  : i32 {
      %cst_60 = arith.constant dense<0.000000e+00> : vector<10xf32>
      %101 = vector.multi_reduction <add>, %arg15, %cst_60 [0] : vector<2x10xf32> to vector<10xf32>
      %102 = vector.shape_cast %101 : vector<10xf32> to vector<1x10xf32>
      %cst_61 = arith.constant 9.99999974E-6 : f32
      %103 = vector.broadcast %cst_61 : f32 to vector<1x10xf32>
      %104 = arith.maximumf %102, %103 : vector<1x10xf32>
      %105 = tpu.reciprocal %104 {approx = true} : vector<1x10xf32> -> vector<1x10xf32>
      %cst_62 = arith.constant 1.000000e-01 : f32
      %106 = vector.broadcast %cst_62 : f32 to vector<1x10xf32>
      %107 = arith.mulf %105, %106 : vector<1x10xf32>
      %108 = vector.broadcast %107 : vector<1x10xf32> to vector<2x10xf32>
      %109 = arith.mulf %arg15, %108 : vector<2x10xf32>
      %cst_63 = arith.constant dense<0.000000e+00> : vector<10xf32>
      %110 = vector.multi_reduction <add>, %109, %cst_63 [0] : vector<2x10xf32> to vector<10xf32>
      %111 = vector.shape_cast %110 : vector<10xf32> to vector<1x10xf32>
      %cst_64 = arith.constant dense<0.000000e+00> : vector<1xf32>
      %112 = vector.multi_reduction <add>, %111, %cst_64 [1] : vector<1x10xf32> to vector<1xf32>
      %113 = vector.shape_cast %112 : vector<1xf32> to vector<1x1xf32>
      %cst_65 = arith.constant 9.99999974E-6 : f32
      %114 = vector.broadcast %cst_65 : f32 to vector<1x1xf32>
      %115 = arith.maximumf %113, %114 : vector<1x1xf32>
      %116 = tpu.reciprocal %115 {approx = true} : vector<1x1xf32> -> vector<1x1xf32>
      %cst_66 = arith.constant 5.000000e-01 : f32
      %117 = vector.broadcast %cst_66 : f32 to vector<1x1xf32>
      %118 = arith.mulf %116, %117 : vector<1x1xf32>
      %119 = vector.broadcast %118 : vector<1x1xf32> to vector<2x10xf32>
      %120 = arith.mulf %109, %119 : vector<2x10xf32>
      %cst_67 = arith.constant dense<0.000000e+00> : vector<10xf32>
      %121 = vector.multi_reduction <add>, %120, %cst_67 [0] : vector<2x10xf32> to vector<10xf32>
      %122 = vector.shape_cast %121 : vector<10xf32> to vector<1x10xf32>
      %cst_68 = arith.constant 9.99999974E-6 : f32
      %123 = vector.broadcast %cst_68 : f32 to vector<1x10xf32>
      %124 = arith.maximumf %122, %123 : vector<1x10xf32>
      %125 = tpu.reciprocal %124 {approx = true} : vector<1x10xf32> -> vector<1x10xf32>
      %cst_69 = arith.constant 1.000000e-01 : f32
      %126 = vector.broadcast %cst_69 : f32 to vector<1x10xf32>
      %127 = arith.mulf %125, %126 : vector<1x10xf32>
      %128 = vector.broadcast %127 : vector<1x10xf32> to vector<2x10xf32>
      %129 = arith.mulf %120, %128 : vector<2x10xf32>
      %cst_70 = arith.constant dense<0.000000e+00> : vector<10xf32>
      %130 = vector.multi_reduction <add>, %129, %cst_70 [0] : vector<2x10xf32> to vector<10xf32>
      %131 = vector.shape_cast %130 : vector<10xf32> to vector<1x10xf32>
      %cst_71 = arith.constant dense<0.000000e+00> : vector<1xf32>
      %132 = vector.multi_reduction <add>, %131, %cst_71 [1] : vector<1x10xf32> to vector<1xf32>
      %133 = vector.shape_cast %132 : vector<1xf32> to vector<1x1xf32>
      %cst_72 = arith.constant 9.99999974E-6 : f32
      %134 = vector.broadcast %cst_72 : f32 to vector<1x1xf32>
      %135 = arith.maximumf %133, %134 : vector<1x1xf32>
      %136 = tpu.reciprocal %135 {approx = true} : vector<1x1xf32> -> vector<1x1xf32>
      %cst_73 = arith.constant 5.000000e-01 : f32
      %137 = vector.broadcast %cst_73 : f32 to vector<1x1xf32>
      %138 = arith.mulf %136, %137 : vector<1x1xf32>
      %139 = vector.broadcast %138 : vector<1x1xf32> to vector<2x10xf32>
      %140 = arith.mulf %129, %139 : vector<2x10xf32>
      %cst_74 = arith.constant dense<0.000000e+00> : vector<10xf32>
      %141 = vector.multi_reduction <add>, %140, %cst_74 [0] : vector<2x10xf32> to vector<10xf32>
      %142 = vector.shape_cast %141 : vector<10xf32> to vector<1x10xf32>
      %cst_75 = arith.constant 9.99999974E-6 : f32
      %143 = vector.broadcast %cst_75 : f32 to vector<1x10xf32>
      %144 = arith.maximumf %142, %143 : vector<1x10xf32>
      %145 = tpu.reciprocal %144 {approx = true} : vector<1x10xf32> -> vector<1x10xf32>
      %cst_76 = arith.constant 1.000000e-01 : f32
      %146 = vector.broadcast %cst_76 : f32 to vector<1x10xf32>
      %147 = arith.mulf %145, %146 : vector<1x10xf32>
      %148 = vector.broadcast %147 : vector<1x10xf32> to vector<2x10xf32>
      %149 = arith.mulf %140, %148 : vector<2x10xf32>
      %cst_77 = arith.constant dense<0.000000e+00> : vector<10xf32>
      %150 = vector.multi_reduction <add>, %149, %cst_77 [0] : vector<2x10xf32> to vector<10xf32>
      %151 = vector.shape_cast %150 : vector<10xf32> to vector<1x10xf32>
      %cst_78 = arith.constant dense<0.000000e+00> : vector<1xf32>
      %152 = vector.multi_reduction <add>, %151, %cst_78 [1] : vector<1x10xf32> to vector<1xf32>
      %153 = vector.shape_cast %152 : vector<1xf32> to vector<1x1xf32>
      %cst_79 = arith.constant 9.99999974E-6 : f32
      %154 = vector.broadcast %cst_79 : f32 to vector<1x1xf32>
      %155 = arith.maximumf %153, %154 : vector<1x1xf32>
      %156 = tpu.reciprocal %155 {approx = true} : vector<1x1xf32> -> vector<1x1xf32>
      %cst_80 = arith.constant 5.000000e-01 : f32
      %157 = vector.broadcast %cst_80 : f32 to vector<1x1xf32>
      %158 = arith.mulf %156, %157 : vector<1x1xf32>
      %159 = vector.broadcast %158 : vector<1x1xf32> to vector<2x10xf32>
      %160 = arith.mulf %149, %159 : vector<2x10xf32>
      %cst_81 = arith.constant dense<0.000000e+00> : vector<10xf32>
      %161 = vector.multi_reduction <add>, %160, %cst_81 [0] : vector<2x10xf32> to vector<10xf32>
      %162 = vector.shape_cast %161 : vector<10xf32> to vector<1x10xf32>
      %cst_82 = arith.constant 9.99999974E-6 : f32
      %163 = vector.broadcast %cst_82 : f32 to vector<1x10xf32>
      %164 = arith.maximumf %162, %163 : vector<1x10xf32>
      %165 = tpu.reciprocal %164 {approx = true} : vector<1x10xf32> -> vector<1x10xf32>
      %cst_83 = arith.constant 1.000000e-01 : f32
      %166 = vector.broadcast %cst_83 : f32 to vector<1x10xf32>
      %167 = arith.mulf %165, %166 : vector<1x10xf32>
      %168 = vector.broadcast %167 : vector<1x10xf32> to vector<2x10xf32>
      %169 = arith.mulf %160, %168 : vector<2x10xf32>
      %cst_84 = arith.constant dense<0.000000e+00> : vector<10xf32>
      %170 = vector.multi_reduction <add>, %169, %cst_84 [0] : vector<2x10xf32> to vector<10xf32>
      %171 = vector.shape_cast %170 : vector<10xf32> to vector<1x10xf32>
      %cst_85 = arith.constant dense<0.000000e+00> : vector<1xf32>
      %172 = vector.multi_reduction <add>, %171, %cst_85 [1] : vector<1x10xf32> to vector<1xf32>
      %173 = vector.shape_cast %172 : vector<1xf32> to vector<1x1xf32>
      %cst_86 = arith.constant 9.99999974E-6 : f32
      %174 = vector.broadcast %cst_86 : f32 to vector<1x1xf32>
      %175 = arith.maximumf %173, %174 : vector<1x1xf32>
      %176 = tpu.reciprocal %175 {approx = true} : vector<1x1xf32> -> vector<1x1xf32>
      %cst_87 = arith.constant 5.000000e-01 : f32
      %177 = vector.broadcast %cst_87 : f32 to vector<1x1xf32>
      %178 = arith.mulf %176, %177 : vector<1x1xf32>
      %179 = vector.broadcast %178 : vector<1x1xf32> to vector<2x10xf32>
      %180 = arith.mulf %169, %179 : vector<2x10xf32>
      scf.yield %180 : vector<2x10xf32>
    }
    %cst_48 = arith.constant 2.000000e+00 : f32
    %78 = vector.broadcast %cst_48 : f32 to vector<2x10xf32>
    %79 = arith.mulf %77, %78 : vector<2x10xf32>
    %cst_49 = arith.constant dense<0xFF800000> : vector<2xf32>
    %80 = vector.multi_reduction <maximumf>, %79, %cst_49 [1] : vector<2x10xf32> to vector<2xf32>
    %81 = vector.shape_cast %80 : vector<2xf32> to vector<2x1xf32>
    %82 = tpu.iota {dimensions = array<i32: 1>} : vector<2x10xi32>
    %83 = vector.broadcast %81 : vector<2x1xf32> to vector<2x10xf32>
    %84 = arith.cmpf oeq, %79, %83 : vector<2x10xf32>
    %c10_i32 = arith.constant 10 : i32
    %85 = vector.broadcast %c10_i32 : i32 to vector<2x10xi32>
    %86 = arith.select %84, %82, %85 : vector<2x10xi1>, vector<2x10xi32>
    %cst_50 = arith.constant dense<2147483647> : vector<2xi32>
    %87 = vector.multi_reduction <minsi>, %86, %cst_50 [1] : vector<2x10xi32> to vector<2xi32>
    %88 = vector.shape_cast %87 : vector<2xi32> to vector<2x1xi32>
    %89 = vector.shape_cast %88 : vector<2x1xi32> to vector<2x1xi32>
    %90 = vector.broadcast %89 : vector<2x1xi32> to vector<2x128xi32>
    %c0_51 = arith.constant 0 : index
    %c0_52 = arith.constant 0 : index
    %91 = vector.load %arg12[%c0_51, %c0_52] : memref<2x128xi32, #tpu.memory_space<vmem>>, vector<2x128xi32>
    tpu.vector_store %arg12[%c0_51, %c0_52], %90 {strides = array<i32>} : memref<2x128xi32, #tpu.memory_space<vmem>>, vector<2x128xi32>,
    %92 = tpu.iota {dimensions = array<i32: 1>} : vector<2x10xi32>
    %93 = vector.broadcast %88 : vector<2x1xi32> to vector<2x10xi32>
    %94 = arith.cmpi eq, %93, %92 : vector<2x10xi32>
    %cst_53 = arith.constant 1.000000e+00 : f32
    %cst_54 = arith.constant 0.000000e+00 : f32
    %95 = vector.broadcast %cst_53 : f32 to vector<2x10xf32>
    %96 = vector.broadcast %cst_54 : f32 to vector<2x10xf32>
    %97 = arith.select %94, %95, %96 : vector<2x10xi1>, vector<2x10xf32>
    %c0_55 = arith.constant 0 : index
    %c0_56 = arith.constant 0 : index
    %98 = vector.load %arg9[%c0_55, %c0_56] : memref<10x128xf32, #tpu.memory_space<vmem>>, vector<10x128xf32>
    %cst_57 = arith.constant dense<0.000000e+00> : vector<2x128xf32>
    %99 = tpu.matmul %97, %98, %cst_57 {dimension_numbers = #tpu.dot_dimension_numbers<[1], [0], [0], [1], [0, 0, 1, 1], [], []>} : vector<2x10xf32>, vector<10x128xf32>, vector<2x128xf32> -> vector<2x128xf32>
    %c0_58 = arith.constant 0 : index
    %c0_59 = arith.constant 0 : index
    %100 = vector.load %arg13[%c0_58, %c0_59] : memref<2x128xf32, #tpu.memory_space<vmem>>, vector<2x128xf32>
    tpu.vector_store %arg13[%c0_58, %c0_59], %99 {strides = array<i32>} : memref<2x128xf32, #tpu.memory_space<vmem>>, vector<2x128xf32>,
    return
  }
  func.func @transform_0(%arg0: i32) -> (i32, i32, i32) {
    %c0_i32 = arith.constant 0 : i32
    %c0_i32_0 = arith.constant 0 : i32
    %c0_i32_1 = arith.constant 0 : i32
    %c0_i32_2 = arith.constant 0 : i32
    return %c0_i32, %c0_i32_0, %c0_i32_1 : i32, i32, i32
  }
  func.func @transform_1(%arg0: i32) -> (i32, i32, i32) {
    %c0_i32 = arith.constant 0 : i32
    %c0_i32_0 = arith.constant 0 : i32
    %c0_i32_1 = arith.constant 0 : i32
    %c0_i32_2 = arith.constant 0 : i32
    return %c0_i32, %c0_i32_0, %c0_i32_1 : i32, i32, i32
  }
  func.func @transform_2(%arg0: i32) -> (i32, i32, i32) {
    %c0_i32 = arith.constant 0 : i32
    %c0_i32_0 = arith.constant 0 : i32
    %c0_i32_1 = arith.constant 0 : i32
    %c0_i32_2 = arith.constant 0 : i32
    return %c0_i32, %c0_i32_0, %c0_i32_1 : i32, i32, i32
  }
  func.func @transform_3(%arg0: i32) -> (i32, i32, i32) {
    %c0_i32 = arith.constant 0 : i32
    %c0_i32_0 = arith.constant 0 : i32
    %c0_i32_1 = arith.constant 0 : i32
    %c0_i32_2 = arith.constant 0 : i32
    return %c0_i32, %c0_i32_0, %c0_i32_1 : i32, i32, i32
  }
  func.func @transform_4(%arg0: i32) -> (i32, i32, i32) {
    %c0_i32 = arith.constant 0 : i32
    %c0_i32_0 = arith.constant 0 : i32
    %c0_i32_1 = arith.constant 0 : i32
    %c0_i32_2 = arith.constant 0 : i32
    return %c0_i32, %c0_i32_0, %c0_i32_1 : i32, i32, i32
  }
  func.func @transform_5(%arg0: i32) -> (i32, i32, i32) {
    %c0_i32 = arith.constant 0 : i32
    %c0_i32_0 = arith.constant 0 : i32
    %c0_i32_1 = arith.constant 0 : i32
    %c0_i32_2 = arith.constant 0 : i32
    return %c0_i32, %c0_i32_0, %c0_i32_1 : i32, i32, i32
  }
  func.func @transform_6(%arg0: i32) -> (i32, i32) {
    %c0_i32 = arith.constant 0 : i32
    %c0_i32_0 = arith.constant 0 : i32
    %c0_i32_1 = arith.constant 0 : i32
    return %c0_i32, %c0_i32_0 : i32, i32
  }
  func.func @transform_7(%arg0: i32) -> (i32, i32, i32) {
    %c0_i32 = arith.constant 0 : i32
    %c0_i32_0 = arith.constant 0 : i32
    %c0_i32_1 = arith.constant 0 : i32
    %c0_i32_2 = arith.constant 0 : i32
    return %c0_i32, %c0_i32_0, %c0_i32_1 : i32, i32, i32
  }
  func.func @transform_8(%arg0: i32) -> (i32, i32) {
    %c0_i32 = arith.constant 0 : i32
    %c0_i32_0 = arith.constant 0 : i32
    %c0_i32_1 = arith.constant 0 : i32
    return %c0_i32, %c0_i32_0 : i32, i32
  }
  func.func @transform_9(%arg0: i32) -> (i32, i32, i32) {
    %c0_i32 = arith.constant 0 : i32
    %c0_i32_0 = arith.constant 0 : i32
    %c0_i32_1 = arith.constant 0 : i32
    %c0_i32_2 = arith.constant 0 : i32
    return %c0_i32, %c0_i32_0, %c0_i32_1 : i32, i32, i32
  }
  func.func @transform_10(%arg0: i32) -> (i32, i32, i32) {
    %c0_i32 = arith.constant 0 : i32
    %c0_i32_0 = arith.constant 0 : i32
    %c0_i32_1 = arith.constant 0 : i32
    %c0_i32_2 = arith.constant 0 : i32
    return %c0_i32, %c0_i32_0, %c0_i32_1 : i32, i32, i32
  }
  func.func @transform_11(%arg0: i32) -> (i32, i32) {
    %c0_i32 = arith.constant 0 : i32
    %c0_i32_0 = arith.constant 0 : i32
    %c0_i32_1 = arith.constant 0 : i32
    return %c0_i32, %c0_i32_0 : i32, i32
  }
  func.func @transform_12(%arg0: i32) -> (i32, i32) {
    %c0_i32 = arith.constant 0 : i32
    %c0_i32_0 = arith.constant 0 : i32
    %c0_i32_1 = arith.constant 0 : i32
    return %c0_i32, %c0_i32_0 : i32, i32
  }
}

</mosaic_0001>

<bundles_post_ra>
// kernel: fn.1
= control target key start
LH: loop header
LB: loop body
LE: loop exit
PB: predicated region body
PF: predicated region fallthrough
CT: control target
= control target key end

     0   :  { %18 = vsyncpa [#allocation3], 0  ;;  %s2295_s0 = inlined_call_operand.vmem [shape: s32[2,8,1], index: 0, kind: input, shape index: {}]   ;;  %s2296_s1 = inlined_call_operand.vmem [shape: f32[2,8,1], index: 1, kind: input, shape index: {}]   ;;  %s2297_s2 = inlined_call_operand.vmem [shape: s32[3,2,1], index: 2, kind: input, shape index: {}]   ;;  %s2298_s3 = inlined_call_operand.vmem [shape: f32[2,50,32], index: 3, kind: input, shape index: {}]   ;;  %s2299_s4 = inlined_call_operand.vmem [shape: f32[3,10,32], index: 4, kind: input, shape index: {}]   ;;  %s2300_s5 = inlined_call_operand.vmem [shape: f32[3,32,128], index: 5, kind: input, shape index: {}]   ;;  %s2301_s6 = inlined_call_operand.vmem [shape: f32[1,128], index: 6, kind: input, shape index: {}]   ;;  %s2302_s7 = inlined_call_operand.hbm [shape: f32[3,128,128], index: 7, kind: input, shape index: {}]   ;;  %s2303_s8 = inlined_call_operand.vmem [shape: f32[10,128], index: 8, kind: input, shape index: {}]   ;;  %s2304_s9 = inlined_call_operand.vmem [shape: f32[3,2,128], index: 9, kind: output, shape index: {0}]   ;;  %s2305_s10 = inlined_call_operand.vmem [shape: f32[3,2,128], index: 10, kind: output, shape index: {1}]   ;;  %s2306_s11 = inlined_call_operand.vmem [shape: s32[2,128], index: 11, kind: output, shape index: {2}]   ;;  %s2307_s12 = inlined_call_operand.hbm [shape: f32[2,128], index: 12, kind: output, shape index: {3}]  }
   0x1   :  { %19 = vsyncpa [#allocation4], 0  ;;  %s1910_s21 = smov [#allocation2]   ;;  %s1846_s25 = scalar_lea.hbm %s2302_s7, 6144 }
   0x2   :  { %s39_s22 = sshll.u32 %s1910_s21, 4  ;;  %p1847_p0 = scmp.ne.s32.totalorder %s2302_s7, %s1846_s25  ;;  %s40_s22 = int_to_ptr.vmem [resolvable:$true] %s39_s22 }
   0x3   :  { %p1850_p1 = scmp.lt.u32.totalorder %s1846_s25, %s2302_s7 }
   0x5   :  { %p1852_p2 = pnand %p1850_p1, %p1847_p0 }
   0x7   :  { %1855 = shalt.err (!%p1852_p2)
}
   0x8   :  { %s1856_s30 = scalar_lea.vmem %s40_s22, 6144  ;;  %p1861_p4 = scmp.lt.s32.totalorder %s40_s22, %s40_s22 }
   0x9   :  { %p1857_p3 = scmp.ne.s32.totalorder %s40_s22, %s1856_s30  ;;  %p1862_p5 = scmp.lt.s32.totalorder %s1856_s30, %s1856_s30 }
   0xb   :  { %p1863_p6 = por %p1862_p5, %p1861_p4 }
   0xd   :  { %p1864_p7 = pnand %p1863_p6, %p1857_p3 }
   0xf   :  { %1867 = shalt.err (!%p1864_p7)
}
  0x10   :  { %s1911_s13 = smov 128   ;;  %s1912_s14 = smov 8  }
  0x11   :  { %45 = dma.hbm_to_vmem [thread:$0]  %s2302_s7, 6144, %s40_s22, [#allocation3], %s1911_s13, %s1911_s13, %s1912_s14  }
  0x12   :  { %1898 = dma.done.wait [#allocation3], 6144  }
  0x13   :  { %1899 = vsyncadd [#allocation3], 4294961152  ;;  %v1913_v0 = vmov 0   ;;  %v1914_v1 = vmov 0.0|0.0   ;;  %vm262_vm0 = vcmask 7168   ;;  %v51_v2 = vld [vmem:[%s2295_s0] sm:$0xff]  ;;  %v55_v40 = vlaneseq }
  0x14   :  { %1812 = vset.pattern.permute.xlu0 %v1913_v0  ;;  %1813 = vset.pattern.permute.xlu1 %v1913_v0  ;;  %v52_v3 = vld [vmem:[%s2295_s0 + $0x8] sm:$0xff]  ;;  %v293_v5 = vld [vmem:[%s2297_s2] sm:$0x3]  ;;  %vm1915_vm1 = vmmov 0   ;;  %v1916_v10 = vmov 0.0   ;;  %v69_v15 = vld [vmem:[%s2298_s3 + $0x10] sm:$0xff] }
  0x15   :  { %1659 = vmatprep.subr.bf16.mxu1 %v1914_v1  ;;  %1677 = vmatprep.subr.bf16.mxu0 %v1914_v1  ;;  %v54_v4 = vld [vmem:[%s2296_s1 + $0x8] sm:$0xff]  ;;  %v53_v7 = vld [vmem:[%s2296_s1] sm:$0xff]  ;;  %v70_v16 = vld [vmem:[%s2298_s3 + $0x18] sm:$0xff]  ;;  %vm85_vm2 = vcmask 1041408   ;;  %vm1917_vm3 = vmmov 1   ;;  %v2065_v41 = vand.u32 127, %v55_v40 }
  0x16   :  { %58 = vperm.xlu0 %1812, %v51_v2   ;;  %v270_v6 = vsel %vm262_vm0, %v54_v4, 0.0  ;;  %297 = vperm.xlu1 %1813, %v293_v5   ;;  %v67_v8 = vld [vmem:[%s2298_s3] sm:$0xff]  ;;  %v68_v9 = vld [vmem:[%s2298_s3 + $0x8] sm:$0xff]  ;;  %v263_v13 = vsel %vm262_vm0, %v53_v7, 0.0  ;;  %v1663_v19 = vpack.c.bf16 %v70_v16, %v69_v15  ;;  %v73_v33 = vld [vmem:[%s2298_s3 + $0x30] sm:$0x3] }
  0x17   :  { %1473 = vmatprep.mubr.msk.f32.mxu1 %vm1915_vm1, %v1916_v10  ;;  %v271_v11 = vrot.slane %v270_v6, 4  ;;  %v295_v12 = vld [vmem:[%s2297_s2 + $0x4] sm:$0x3]  ;;  %v1660_v14 = vpack.c.bf16 %v68_v9, %v67_v8  ;;  %1497 = vmatprep.mubr.msk.f32.mxu0 %vm1915_vm1, %v1916_v10  ;;  %v264_v17 = vrot.slane %v263_v13, 4  ;;  %v294_v20 = vld [vmem:[%s2297_s2 + $0x2] sm:$0x3]  ;;  %vm2058_vm4 = vmpackc.low %vm85_vm2, %vm1917_vm3 }
  0x18   :  { %v71_v22 = vld [vmem:[%s2298_s3 + $0x20] sm:$0xff]  ;;  %v72_v23 = vld [vmem:[%s2298_s3 + $0x28] sm:$0xff]  ;;  %v74_v42 = vld [vmem:[%s2298_s3 + $0x38] sm:$0xff]  ;;  %vm81_vm5 = vcmask 408576   ;;  %vm322_vm8 = vcmask 80896   ;;  %vm247_vm12 = vcmask 261120  }
  0x19   :  { %v272_v18 = vadd.f32 %v271_v11, %v270_v6  ;;  %1661 = vmatpush3.bf16.msra.mxu1 %v1660_v14  ;;  %v265_v21 = vadd.f32 %v264_v17, %v263_v13  ;;  %v1666_v27 = vpack.c.bf16 %v72_v23, %v71_v22  ;;  %v311_v36 = vld [vmem:[%s2299_s4] sm:$0xff]  ;;  %v312_v37 = vld [vmem:[%s2299_s4 + $0x8] sm:$0x3]  ;;  %v77_v49 = vld [vmem:[%s2298_s3 + $0x50] sm:$0xff]  ;;  %vm319_vm13 = vcmask 1041409   ;;  %s2240_s20 = smov 0  }
  0x1a   :  { %61 = vperm.xlu0 %1812, %v52_v3   ;;  %303 = vperm.xlu1 %1813, %v295_v12   ;;  %v1678_v38 = vpack.c.bf16 %v312_v37, %v311_v36  ;;  %v75_v43 = vld [vmem:[%s2298_s3 + $0x40] sm:$0xff]  ;;  %v316_v45 = vld [vmem:[%s2299_s4 + $0x28] sm:$0x3]  ;;  %v78_v55 = vld [vmem:[%s2298_s3 + $0x58] sm:$0xff]  ;;  %vm1057_vm14 = vcmask 74752  }
  0x1b   :  { %1662 = vmatprep.subr.bf16.mxu1 %v1914_v1  ;;  %v273_v24 = vrot.slane %v272_v18, 2  ;;  %v266_v25 = vrot.slane %v265_v21, 2  ;;  %v315_v44 = vld [vmem:[%s2299_s4 + $0x20] sm:$0xff]  ;;  %v1669_v47 = vpack.c.bf16 %v75_v43, %v74_v42  ;;  %v76_v48 = vld [vmem:[%s2298_s3 + $0x48] sm:$0xff]  ;;  %v313_v61 = vld [vmem:[%s2299_s4 + $0x10] sm:$0xff] }
  0x1c   :  { %1680 = vmatpush3.bf16.msk.msra.mxu0 %vm2058_vm4, %v1678_v38  ;;  %v1686_v52 = vpack.c.bf16 %v316_v45, %v315_v44  ;;  %v1672_v54 = vpack.c.bf16 %v77_v49, %v76_v48  ;;  %v79_v56 = vld [vmem:[%s2298_s3 + $0x60] sm:$0xff]  ;;  %v314_v62 = vld [vmem:[%s2299_s4 + $0x18] sm:$0x3]  ;;  %v80_v63 = vld [vmem:[%s2298_s3 + $0x68] sm:$0x3] }
  0x1d   :  { %v274_v26 = vadd.f32 %v273_v24, %v272_v18  ;;  %1664 = vmatpush3.bf16.msra.mxu1 %v1663_v19  ;;  %v267_v28 = vadd.f32 %v266_v25, %v265_v21  ;;  %1685 = vmatprep.subr.bf16.mxu0 %v1914_v1  ;;  %v1675_v60 = vpack.c.bf16 %v79_v56, %v78_v55  ;;  %v551_v5 = vld [vmem:[%s2300_s5] sm:$0xff]  ;;  %v552_v6 = vld [vmem:[%s2300_s5 + $0x8] sm:$0xff]  ;;  %v553_v12 = vld [vmem:[%s2300_s5 + $0x10] sm:$0xff] }
  0x1e   :  { %300 = vperm.xlu0 %1812, %v294_v20   ;;  %237 = vperm.xlu1 %1813, %v53_v7   ;;  %v1682_v2 = vpack.c.bf16 %v314_v62, %v313_v61  ;;  %v1690_v7 = vpack.c.bf16 %v552_v6, %v551_v5  ;;  %v555_v8 = vld [vmem:[%s2300_s5 + $0x20] sm:$0xff]  ;;  %v556_v9 = vld [vmem:[%s2300_s5 + $0x28] sm:$0xff]  ;;  %v554_v13 = vld [vmem:[%s2300_s5 + $0x18] sm:$0xff] }
  0x1f   :  { %1665 = vmatprep.subr.bf16.mxu1 %v1914_v1  ;;  %v275_v29 = vrot.slane %v274_v26, 1  ;;  %v268_v30 = vrot.slane %v267_v28, 1  ;;  %v1696_v11 = vpack.c.bf16 %v556_v9, %v555_v8  ;;  %v1693_v14 = vpack.c.bf16 %v554_v13, %v553_v12  ;;  %v557_v15 = vld [vmem:[%s2300_s5 + $0x30] sm:$0xff]  ;;  %v558_v16 = vld [vmem:[%s2300_s5 + $0x38] sm:$0xff]  ;;  %v795_v56 = vld [vmem:[#allocation2] sm:$0xff] }
  0x20   :  { %v1699_v17 = vpack.c.bf16 %v558_v16, %v557_v15  ;;  %v811_v6 = vld [vmem:[#allocation2 + $0x80] sm:$0xff]  ;;  %v813_v13 = vld [vmem:[#allocation2 + $0x90] sm:$0xff] }
  0x21   :  { %v276_v31 = vadd.f32 %v275_v29, %v274_v26  ;;  %1667 = vmatpush3.bf16.msra.mxu1 %v1666_v27  ;;  %v269_v32 = vadd.f32 %v268_v30, %v267_v28  ;;  %v799_v9 = vld [vmem:[#allocation2 + $0x20] sm:$0xff]  ;;  %v801_v16 = vld [vmem:[#allocation2 + $0x30] sm:$0xff] }
  0x22   :  { %242 = vperm.xlu0 %1812, %v54_v4   ;;  %1471 = vmatprep.subr.mxu1 %v1916_v10 }
  0x23   :  { %v278_v34 = vmax.f32 %v276_v31, 1.0  ;;  %v277_v35 = vmax.f32 %v269_v32, 1.0 }
  0x25   :  { %1472 = vmatpush3.msk.msra.mxu1 %vm85_vm2, %v73_v33  ;;  %281 = vperm.xlu1 %1813, %v277_v35  }
  0x26   :  { %286 = vperm.xlu0 %1812, %v278_v34   ;;  %1668 = vmatprep.subr.bf16.mxu1 %v1914_v1 }
  0x95   :  { %v59_v46 = vpop.permute.xlu0 %58  ;;  %v298_v50 = vpop.permute.xlu1 %297 }
  0x96   :  { %vm63_vm6 = vcmp.eq.s32.totalorder %v59_v46, %v2065_v41  ;;  %vm305_vm7 = vcmp.eq.s32.totalorder %v298_v50, %v2065_v41 }
  0x97   :  { %v65_v51 = vsel %vm63_vm6, 1.0, %v1916_v10  ;;  %v308_v53 = vsel %vm305_vm7, 1.0, %v1916_v10 }
  0x98   :  { %1474 = vmatmul.mubr.msk.f32.vlgmr.msra.gmra.mrb[0].mxu1 %vm81_vm5, %v65_v51  ;;  %1498 = vmatmul.mubr.msk.f32.vlgmr.msra.gmra.mrb[0].mxu0 %vm322_vm8, %v308_v53  ;;  %v560_v53 = vld [vmem:[%s2300_s5 + $0x48] sm:$0xff] }
  0x99   :  { %1670 = vmatpush3.bf16.msra.mxu1 %v1669_v47  ;;  %1490 = vmatprep.mubr.msk.f32.mxu1 %vm1915_vm1, %v1916_v10  ;;  %v304_v57 = vpop.permute.xlu1 %303  ;;  %v62_v59 = vpop.permute.xlu0 %61 }
  0x9a   :  { %1671 = vmatprep.subr.bf16.mxu1 %v1914_v1  ;;  %vm307_vm9 = vcmp.eq.s32.totalorder %v304_v57, %v2065_v41  ;;  %1688 = vmatpush3.bf16.msk.msra.mxu0 %vm2058_vm4, %v1686_v52  ;;  %vm64_vm10 = vcmp.eq.s32.totalorder %v62_v59, %v2065_v41  ;;  %v559_v52 = vld [vmem:[%s2300_s5 + $0x40] sm:$0xff]  ;;  %v796_v57 = vld [vmem:[#allocation2 + $0x8] sm:$0xff] }
  0x9b   :  { %1511 = vmatprep.mubr.msk.f32.mxu0 %vm1915_vm1, %v1916_v10  ;;  %v310_v58 = vsel %vm307_vm9, 1.0, %v1916_v10  ;;  %1695 = vmatprep.subr.bf16.mxu0 %v1914_v1  ;;  %v66_v3 = vsel %vm64_vm10, 1.0, %v1916_v10  ;;  %v1702_v59 = vpack.c.bf16 %v560_v53, %v559_v52  ;;  %v1359_v52 = vld [vmem:[%s2301_s6] ss:$0 sm:$0xff] }
  0x9d   :  { %1673 = vmatpush3.bf16.msra.mxu1 %v1672_v54  ;;  %1512 = vmatmul.mubr.msk.f32.vlgmr.msra.gmra.mrb[2].mxu0 %vm322_vm8, %v310_v58  ;;  %v301_v0 = vpop.permute.xlu0 %300  ;;  %v238_v18 = vpop.permute.xlu1 %237 }
  0x9e   :  { %1674 = vmatprep.subr.bf16.mxu1 %v1914_v1  ;;  %1533 = vmatprep.mubr.msk.f32.mxu0 %vm1915_vm1, %v1916_v10  ;;  %vm306_vm11 = vcmp.eq.s32.totalorder %v301_v0, %v2065_v41  ;;  %v562_v0 = vld [vmem:[%s2300_s5 + $0x58] sm:$0xff] }
  0x9f   :  { %v309_v4 = vsel %vm306_vm11, 1.0, %v1916_v10  ;;  %1697 = vmatpush3.bf16.msra.mxu0 %v1696_v11  ;;  %v800_v11 = vld [vmem:[#allocation2 + $0x28] sm:$0xff] }
  0xa0   :  { %1698 = vmatprep.subr.bf16.mxu0 %v1914_v1  ;;  %v1714_v15 = vpack.c.bf16 %v800_v11, %v799_v9  ;;  %v833_v11 = vld [vmem:[#allocation2 + $0x130] sm:$0xff] }
  0xa1   :  { %1676 = vmatpush3.bf16.msra.mxu1 %v1675_v60  ;;  %v243_v28 = vpop.permute.xlu0 %242 }
  0xa2   :  { %1488 = vmatprep.subr.mxu1 %v1916_v10 }
  0xa3   :  { %1700 = vmatpush3.bf16.msra.mxu0 %v1699_v17  ;;  %v802_v17 = vld [vmem:[#allocation2 + $0x38] sm:$0xff] }
  0xa4   :  { %1707 = vmatprep.subr.bf16.mxu0 %v1914_v1  ;;  %v282_v35 = vpop.permute.xlu1 %281 }
  0xa5   :  { %1489 = vmatpush3.msk.msra.mxu1 %vm85_vm2, %v80_v63  ;;  %v287_v32 = vpop.permute.xlu0 %286  ;;  %v561_v63 = vld [vmem:[%s2300_s5 + $0x50] sm:$0xff] }
  0xa6   :  { %1491 = vmatmul.mubr.msk.f32.vlgmr.msra.gmra.mrb[2].mxu1 %vm81_vm5, %v66_v3  ;;  %1681 = vmatprep.subr.bf16.mxu1 %v1914_v1  ;;  %1814 = vrcp.f32 %v287_v32  ;;  %v797_v3 = vld [vmem:[#allocation2 + $0x10] sm:$0xff]  ;;  %v1705_v5 = vpack.c.bf16 %v562_v0, %v561_v63 }
  0xa7   :  { %1684 = vmatpush3.bf16.msk.msra.mxu1 %vm2058_vm4, %v1682_v2  ;;  %1504 = vmatprep.mubr.msk.f32.mxu1 %vm1915_vm1, %v1916_v10  ;;  %1816 = vrcp.f32 %v282_v35  ;;  %v1708_v2 = vpack.c.bf16 %v796_v57, %v795_v56  ;;  %v805_v32 = vld [vmem:[#allocation2 + $0x50] sm:$0xff] }
  0xa8   :  { %1689 = vmatprep.subr.bf16.mxu1 %v1914_v1  ;;  %v821_v35 = vld [vmem:[#allocation2 + $0xd0] sm:$0xff] }
  0xaa   :  { %1505 = vmatmul.mubr.msk.f32.vlgmr.msra.gmra.mrb[4].mxu1 %vm322_vm8, %v309_v4  ;;  %v798_v4 = vld [vmem:[#allocation2 + $0x18] sm:$0xff] }
  0xab   :  { %1522 = vmatprep.mubr.msk.f32.mxu1 %vm1915_vm1, %v1916_v10  ;;  %1691 = vmatpush3.bf16.msra.mxu1 %v1690_v7  ;;  %v812_v7 = vld [vmem:[#allocation2 + $0x88] sm:$0xff]  ;;  %v1711_v8 = vpack.c.bf16 %v798_v4, %v797_v3  ;;  %v830_v3 = vld [vmem:[#allocation2 + $0x118] sm:$0xff] }
  0xac   :  { %1692 = vmatprep.subr.bf16.mxu1 %v1914_v1  ;;  %v1732_v12 = vpack.c.bf16 %v812_v7, %v811_v6  ;;  %v831_v7 = vld [vmem:[#allocation2 + $0x120] sm:$0xff] }
  0xaf   :  { %1694 = vmatpush3.bf16.msra.mxu1 %v1693_v14  ;;  %v814_v14 = vld [vmem:[#allocation2 + $0x98] sm:$0xff] }
  0xb0   :  { %1701 = vmatprep.subr.bf16.mxu1 %v1914_v1  ;;  %v1815_v49 = vpop.eup %1814 }
  0xb1   :  { %v1817_v51 = vpop.eup %1816 }
 0x16b   :  { %v155_v19 = vpop.f32.mrb[0].mxu1  ;;  %v395_v22 = vpop.f32.mrb[0].mxu0 }
 0x16c   :  { %v245_v20 = vmul.f32 %v238_v18, %v155_v19  ;;  %v1475_v21 = vpop.f32.mrb[1].mxu1  ;;  %v1499_v24 = vpop.f32.mrb[1].mxu0  ;;  %v1735_v18 = vpack.c.bf16 %v814_v14, %v813_v13  ;;  %v815_v19 = vld [vmem:[#allocation2 + $0xa0] sm:$0xff] }
 0x16d   :  { %v1717_v21 = vpack.c.bf16 %v802_v17, %v801_v16  ;;  %v836_v16 = vld [vmem:[#allocation2 + $0x148] sm:$0xff] }
 0x16e   :  { %v248_v23 = vsel %vm247_vm12, %v245_v20, 0.0  ;;  %v816_v20 = vld [vmem:[#allocation2 + $0xa8] sm:$0xff] }
 0x16f   :  { %v249_v25 = vrot.slane %v248_v23, 4  ;;  %v1738_v24 = vpack.c.bf16 %v816_v20, %v815_v19  ;;  %v838_v19 = vld [vmem:[#allocation2 + $0x158] sm:$0xff] }
 0x170   :  { %v547_v26 = vpop.f32.mrb[2].mxu0 }
 0x171   :  { %v1513_v27 = vpop.f32.mrb[3].mxu0  ;;  %v250_v29 = vadd.f32 %v249_v25, %v248_v23  ;;  %v804_v23 = vld [vmem:[#allocation2 + $0x48] sm:$0xff]  ;;  %v817_v25 = vld [vmem:[#allocation2 + $0xb0] sm:$0xff] }
 0x173   :  { %v251_v30 = vrot.slane %v250_v29, 2 }
 0x175   :  { %v252_v37 = vadd.f32 %v251_v30, %v250_v29  ;;  %v819_v29 = vld [vmem:[#allocation2 + $0xc0] sm:$0xff]  ;;  %v820_v30 = vld [vmem:[#allocation2 + $0xc8] sm:$0xff] }
 0x177   :  { %v253_v44 = vrot.slane %v252_v37, 1 }
 0x179   :  { %v231_v31 = vpop.f32.mrb[2].mxu1  ;;  %v254_v47 = vadd.f32 %v253_v44, %v252_v37  ;;  %v824_v44 = vld [vmem:[#allocation2 + $0xe8] sm:$0xff] }
 0x17a   :  { %v246_v33 = vmul.f32 %v243_v28, %v231_v31  ;;  %v1492_v34 = vpop.f32.mrb[3].mxu1  ;;  %v1744_v31 = vpack.c.bf16 %v820_v30, %v819_v29 }
 0x17b   :  { %v290_v54 = vmul.f32 %v1817_v51, %v254_v47  ;;  %v810_v47 = vld [vmem:[#allocation2 + $0x78] sm:$0xff] }
 0x17c   :  { %v255_v36 = vsel %vm247_vm12, %v246_v33, 0.0  ;;  %v806_v33 = vld [vmem:[#allocation2 + $0x58] sm:$0xff] }
 0x17d   :  { %v256_v38 = vrot.slane %v255_v36, 4  ;;  %v471_v40 = vpop.f32.mrb[4].mxu1  ;;  %v1723_v34 = vpack.c.bf16 %v806_v33, %v805_v32 }
 0x17e   :  { %v1506_v42 = vpop.f32.mrb[5].mxu1 }
 0x17f   :  { %v257_v43 = vadd.f32 %v256_v38, %v255_v36  ;;  %v822_v36 = vld [vmem:[#allocation2 + $0xd8] sm:$0xff]  ;;  %v807_v38 = vld [vmem:[#allocation2 + $0x60] sm:$0xff] }
 0x180   :  { %v1747_v37 = vpack.c.bf16 %v822_v36, %v821_v35 }
 0x181   :  { %v258_v45 = vrot.slane %v257_v43, 2 }
 0x183   :  { %v259_v46 = vadd.f32 %v258_v45, %v257_v43  ;;  %v823_v43 = vld [vmem:[#allocation2 + $0xe0] sm:$0xff] }
 0x184   :  { %v1750_v45 = vpack.c.bf16 %v824_v44, %v823_v43 }
 0x185   :  { %v260_v48 = vrot.slane %v259_v46, 1 }
 0x187   :  { %v261_v50 = vadd.f32 %v260_v48, %v259_v46  ;;  %v809_v46 = vld [vmem:[#allocation2 + $0x70] sm:$0xff] }
 0x188   :  { %v1729_v48 = vpack.c.bf16 %v810_v47, %v809_v46 }
 0x189   :  { %v292_v55 = vmul.f32 %v1815_v49, %v261_v50  ;;  %v825_v49 = vld [vmem:[#allocation2 + $0xf0] sm:$0xff]  ;;  %v826_v50 = vld [vmem:[#allocation2 + $0xf8] sm:$0xff] }
 0x18a   :  { %v1753_v51 = vpack.c.bf16 %v826_v50, %v825_v49 }
 0x18b   :  { %v320_v58 = vsel %vm319_vm13, %v292_v55, %v290_v54 }
 0x18c   :  { %v472_v60 = vadd.f32 %v471_v40, %v320_v58  ;;  %v396_v61 = vadd.f32 %v395_v22, %v320_v58  ;;  %v548_v62 = vadd.f32 %v547_v26, %v320_v58  ;;  %v803_v22 = vld [vmem:[#allocation2 + $0x40] sm:$0xff]  ;;  %v818_v26 = vld [vmem:[#allocation2 + $0xb8] sm:$0xff]  ;;  %v808_v40 = vld [vmem:[#allocation2 + $0x68] sm:$0xff] }
 0x18d   :  { %v1720_v27 = vpack.c.bf16 %v804_v23, %v803_v22  ;;  %v1741_v28 = vpack.c.bf16 %v818_v26, %v817_v25  ;;  %v1726_v42 = vpack.c.bf16 %v808_v40, %v807_v38  ;;  %v840_v22 = vld [vmem:[#allocation2 + $0x168] sm:$0xff]  ;;  %v842_v25 = vld [vmem:[#allocation2 + $0x178] sm:$0xff] }
 0x18e   :  { %1523 = vmatmul.mubr.msk.f32.vlgmr.msra.gmra.mrb[6].mxu1 %vm247_vm12, %v396_v61  ;;  %1534 = vmatmul.mubr.msk.f32.vlgmr.msra.gmra.mrb[4].mxu0 %vm247_vm12, %v472_v60  ;;  %v827_v60 = vld [vmem:[#allocation2 + $0x100] sm:$0xff]  ;;  %v828_v61 = vld [vmem:[#allocation2 + $0x108] sm:$0xff] }
 0x18f   :  { %1703 = vmatpush3.bf16.msra.mxu1 %v1702_v59  ;;  %1544 = vmatprep.mubr.msk.f32.mxu1 %vm1915_vm1, %v1916_v10  ;;  %v1756_v0 = vpack.c.bf16 %v828_v61, %v827_v60 }
 0x190   :  { %1704 = vmatprep.subr.bf16.mxu1 %v1914_v1  ;;  %1709 = vmatpush3.bf16.msra.mxu0 %v1708_v2  ;;  %v829_v2 = vld [vmem:[#allocation2 + $0x110] sm:$0xff] }
 0x191   :  { %1710 = vmatprep.subr.bf16.mxu0 %v1914_v1  ;;  %1579 = vmatprep.mubr.msk.f32.mxu0 %vm1915_vm1, %v1916_v10  ;;  %v1759_v6 = vpack.c.bf16 %v830_v3, %v829_v2 }
 0x193   :  { %1706 = vmatpush3.bf16.msra.mxu1 %v1705_v5 }
 0x194   :  { %1731 = vmatprep.subr.bf16.mxu1 %v1914_v1  ;;  %1712 = vmatpush3.bf16.msra.mxu0 %v1711_v8  ;;  %v832_v8 = vld [vmem:[#allocation2 + $0x128] sm:$0xff] }
 0x195   :  { %1713 = vmatprep.subr.bf16.mxu0 %v1914_v1  ;;  %v1762_v9 = vpack.c.bf16 %v832_v8, %v831_v7 }
 0x196   :  { %1545 = vmatmul.mubr.msk.f32.vlgmr.msra.gmra.mrb[8].mxu1 %vm247_vm12, %v548_v62 }
 0x197   :  { %1733 = vmatpush3.bf16.msra.mxu1 %v1732_v12  ;;  %1614 = vmatprep.mubr.msk.f32.mxu1 %vm1915_vm1, %v1916_v10  ;;  %v834_v12 = vld [vmem:[#allocation2 + $0x138] sm:$0xff] }
 0x198   :  { %1734 = vmatprep.subr.bf16.mxu1 %v1914_v1  ;;  %1715 = vmatpush3.bf16.msra.mxu0 %v1714_v15  ;;  %v1765_v14 = vpack.c.bf16 %v834_v12, %v833_v11  ;;  %v835_v15 = vld [vmem:[#allocation2 + $0x140] sm:$0xff] }
 0x199   :  { %1716 = vmatprep.subr.bf16.mxu0 %v1914_v1  ;;  %v1768_v17 = vpack.c.bf16 %v836_v16, %v835_v15 }
 0x19b   :  { %1736 = vmatpush3.bf16.msra.mxu1 %v1735_v18  ;;  %v837_v18 = vld [vmem:[#allocation2 + $0x150] sm:$0xff] }
 0x19c   :  { %1737 = vmatprep.subr.bf16.mxu1 %v1914_v1  ;;  %1718 = vmatpush3.bf16.msra.mxu0 %v1717_v21  ;;  %v1771_v20 = vpack.c.bf16 %v838_v19, %v837_v18  ;;  %v839_v21 = vld [vmem:[#allocation2 + $0x160] sm:$0xff] }
 0x19d   :  { %1719 = vmatprep.subr.bf16.mxu0 %v1914_v1  ;;  %v1774_v23 = vpack.c.bf16 %v840_v22, %v839_v21 }
 0x19f   :  { %1739 = vmatpush3.bf16.msra.mxu1 %v1738_v24  ;;  %v841_v24 = vld [vmem:[#allocation2 + $0x170] sm:$0xff] }
 0x1a0   :  { %1740 = vmatprep.subr.bf16.mxu1 %v1914_v1  ;;  %1721 = vmatpush3.bf16.msra.mxu0 %v1720_v27  ;;  %v1777_v26 = vpack.c.bf16 %v842_v25, %v841_v24 }
 0x1a1   :  { %1722 = vmatprep.subr.bf16.mxu0 %v1914_v1 }
 0x1a3   :  { %1742 = vmatpush3.bf16.msra.mxu1 %v1741_v28 }
 0x1a4   :  { %1743 = vmatprep.subr.bf16.mxu1 %v1914_v1  ;;  %1724 = vmatpush3.bf16.msra.mxu0 %v1723_v34 }
 0x1a5   :  { %1725 = vmatprep.subr.bf16.mxu0 %v1914_v1 }
 0x1a7   :  { %1745 = vmatpush3.bf16.msra.mxu1 %v1744_v31 }
 0x1a8   :  { %1746 = vmatprep.subr.bf16.mxu1 %v1914_v1  ;;  %1727 = vmatpush3.bf16.msra.mxu0 %v1726_v42 }
 0x1a9   :  { %1728 = vmatprep.subr.bf16.mxu0 %v1914_v1 }
 0x1ab   :  { %1748 = vmatpush3.bf16.msra.mxu1 %v1747_v37 }
 0x1ac   :  { %1749 = vmatprep.subr.bf16.mxu1 %v1914_v1  ;;  %1730 = vmatpush3.bf16.msra.mxu0 %v1729_v48 }
 0x1ad   :  { %1755 = vmatprep.subr.bf16.mxu0 %v1914_v1 }
 0x1af   :  { %1751 = vmatpush3.bf16.msra.mxu1 %v1750_v45 }
 0x1b0   :  { %1752 = vmatprep.subr.bf16.mxu1 %v1914_v1 }
 0x1b3   :  { %1754 = vmatpush3.bf16.msra.mxu1 %v1753_v51 }
 0x261   :  { %v639_v53 = vpop.f32.mrb[6].mxu1  ;;  %v712_v54 = vpop.f32.mrb[4].mxu0 }
 0x262   :  { %v640_v55 = vadd.f32 %v1359_v52, %v639_v53  ;;  %v713_v56 = vadd.f32 %v1359_v52, %v712_v54  ;;  %v1524_v57 = vpop.f32.mrb[7].mxu1  ;;  %v1535_v58 = vpop.f32.mrb[5].mxu0 }
 0x264   :  { %1818 = vtanh.f32 %v640_v55 }
 0x265   :  { %1820 = vtanh.f32 %v713_v56 }
 0x269   :  { %v785_v59 = vpop.f32.mrb[8].mxu1 }
 0x26a   :  { %v786_v62 = vadd.f32 %v1359_v52, %v785_v59  ;;  %v1546_v63 = vpop.f32.mrb[9].mxu1 }
 0x26c   :  { %1822 = vtanh.f32 %v786_v62 }
 0x26e   :  { %v1819_v4 = vpop.eup %1818 }
 0x26f   :  { %v1821_v5 = vpop.eup %1820  ;;  %792 = vst [vmem:[%s2304_s9] sm:$0x3] %v1819_v4  ;;  %1580 = vmatmul.mubr.f32.vlgmr.msra.gmra.mrb[6].mxu0 %v1819_v4 }
 0x270   :  { %793 = vst [vmem:[%s2304_s9 + $0x2] sm:$0x3] %v1821_v5  ;;  %1615 = vmatmul.mubr.f32.vlgmr.msra.gmra.mrb[10].mxu1 %v1821_v5  ;;  %1757 = vmatpush3.bf16.msra.mxu0 %v1756_v0 }
 0x271   :  { %1758 = vmatprep.subr.bf16.mxu0 %v1914_v1  ;;  %1649 = vmatprep.mubr.msk.f32.mxu0 %vm1915_vm1, %v1916_v10 }
 0x274   :  { %1760 = vmatpush3.bf16.msra.mxu0 %v1759_v6 }
 0x275   :  { %1761 = vmatprep.subr.bf16.mxu0 %v1914_v1 }
 0x276   :  { %v1823_v13 = vpop.eup %1822 }
 0x277   :  { %794 = vst [vmem:[%s2304_s9 + $0x4] sm:$0x3] %v1823_v13 }
 0x278   :  { %1763 = vmatpush3.bf16.msra.mxu0 %v1762_v9 }
 0x279   :  { %1764 = vmatprep.subr.bf16.mxu0 %v1914_v1 }
 0x27c   :  { %1766 = vmatpush3.bf16.msra.mxu0 %v1765_v14 }
 0x27d   :  { %1767 = vmatprep.subr.bf16.mxu0 %v1914_v1 }
 0x280   :  { %1769 = vmatpush3.bf16.msra.mxu0 %v1768_v17 }
 0x281   :  { %1770 = vmatprep.subr.bf16.mxu0 %v1914_v1 }
 0x284   :  { %1772 = vmatpush3.bf16.msra.mxu0 %v1771_v20 }
 0x285   :  { %1773 = vmatprep.subr.bf16.mxu0 %v1914_v1 }
 0x288   :  { %1775 = vmatpush3.bf16.msra.mxu0 %v1774_v23 }
 0x289   :  { %1776 = vmatprep.subr.bf16.mxu0 %v1914_v1 }
 0x28c   :  { %1778 = vmatpush3.bf16.msra.mxu0 %v1777_v26 }
 0x28f   :  { %1650 = vmatmul.mubr.f32.vlgmr.msra.gmra.mrb[8].mxu0 %v1823_v13 }
 0x342   :  { %v909_v27 = vpop.f32.mrb[6].mxu0 }
 0x343   :  { %1053 = vst [vmem:[%s2305_s10] sm:$0x3] %v909_v27  ;;  %v979_v28 = vpop.f32.mrb[10].mxu1  ;;  %v1581_v29 = vpop.f32.mrb[7].mxu0 }
 0x344   :  { %1054 = vst [vmem:[%s2305_s10 + $0x2] sm:$0x3] %v979_v28  ;;  %v1616_v30 = vpop.f32.mrb[11].mxu1 }
 0x362   :  { %v1049_v31 = vpop.f32.mrb[8].mxu0 }
 0x363   :  { %1055 = vst [vmem:[%s2305_s10 + $0x4] sm:$0x3] %v1049_v31  ;;  %v1056_v32 = vsub.f32 0.0, %v1049_v31  ;;  %v1651_v33 = vpop.f32.mrb[9].mxu0 }
 0x365   :  { %v1068_v34 = vsel %vm1057_vm14, %v1056_v32, inf  ;;  %v1058_v35 = vsel %vm1057_vm14, %v1056_v32, -inf }
 0x366   :  { %1069 = vmin.xlane.f32.xlu0 %v1068_v34  ;;  %1059 = vmax.xlane.f32.xlu1 %v1058_v35 }
 0x3f3   :  { %v1070_v36 = vpop.xlane.xlu0 %1069  ;;  %v1060_v37 = vpop.xlane.xlu1 %1059 }
 0x3f4   :  { %v1071_v38 = vrot.slane %v1070_v36, 4  ;;  %v1061_v40 = vrot.slane %v1060_v37, 4 }
 0x3f6   :  { %v1072_v42 = vmin.f32 %v1070_v36, %v1071_v38  ;;  %v1062_v43 = vmax.f32 %v1060_v37, %v1061_v40 }
 0x3f8   :  { %v1073_v44 = vrot.slane %v1072_v42, 2  ;;  %v1063_v45 = vrot.slane %v1062_v43, 2 }
 0x3fa   :  { %v1064_v46 = vmax.f32 %v1062_v43, %v1063_v45  ;;  %v1074_v47 = vmin.f32 %v1072_v42, %v1073_v44 }
 0x3fc   :  { %v1065_v48 = vrot.slane %v1064_v46, 1  ;;  %v1075_v49 = vrot.slane %v1074_v47, 1 }
 0x3fe   :  { %v1066_v50 = vmax.f32 %v1064_v46, %v1065_v48  ;;  %v1076_v51 = vmin.f32 %v1074_v47, %v1075_v49 }
 0x400   :  { %1783 = vpush %v1066_v50 }
 0x401   :  { %1785 = vpush %v1076_v51 }
 0x431   :  { %s1784_s10 = spop %1783 }
 0x432   :  { %s1786_s15 = spop %1785 }
 0x433   :  { %s1078_s16 = sadd.f32 %s1786_s15, %s1784_s10 }
 0x435   :  { %s1079_s17 = smul.f32 0.5, %s1078_s16 }
 0x437   :  { %s1080_s18 = ssub.f32 %s1784_s10, %s1079_s17  ;;  %v1082_v53 = vstv %s1079_s17 }
 0x438   :  { %v1083_v54 = vsub.f32 %v1056_v32, %v1082_v53 }
 0x439   :  { %s1081_s19 = sadd.f32 1e-05, %s1080_s18 }
 0x43b   :  { %v1084_v52 = vstv %s1081_s19 }
 0x43c   :  { %1824 = vrcp.f32 %v1084_v52 }
 0x446   :  { %v1825_v55 = vpop.eup %1824 }
 0x447   :  { %v1086_v56 = vmul.f32 %v1825_v55, %v1083_v54 }
 0x449   :  { %v1087_v57 = vsub.f32 0.0, %v1086_v56 }
 0x44b   :  { %v1088_v58 = vmul.f32 33.333332, %v1087_v57 }
 0x44d   :  { %v1089_v59 = vmul.f32 1.442695, %v1088_v58 }
 0x44f   :  { %1826 = vpow2.f32 %v1089_v59 }
 0x459   :  { %v1827_v60 = vpop.eup %1826 }
 0x45a   :  { %v1091_v61 = vsel %vm1057_vm14, %v1827_v60, 0.0 }
 0x45b   :  { %v1092_v62 = vrot.slane %v1091_v61, 4 }
 0x45d   :  { %v1093_v63 = vadd.f32 %v1092_v62, %v1091_v61 }
 0x45f   :  { %v1094_v0 = vrot.slane %v1093_v63, 2 }
 0x461   :  { %v1095_v2 = vadd.f32 %v1094_v0, %v1093_v63 }
 0x463   :  { %v1096_v3 = vrot.slane %v1095_v2, 1 }
 0x465   :  { %v1097_v4 = vadd.f32 %v1096_v3, %v1095_v2 }
 0x467   :  { %v1098_v5 = vsel %vm322_vm8, %v1097_v4, 0.0 }
 0x468   :  { %1099 = vadd.xlane.f32.xlu0 %v1098_v5 }
 0x4f5   :  { %v1100_v6 = vpop.xlane.xlu0 %1099 }
 0x4f6   :  { %v1101_v7 = vmax.f32 %v1100_v6, 1e-05 }
 0x4f8   :  { %1828 = vrcp.f32 %v1101_v7 }
 0x502   :  { %v1829_v8 = vpop.eup %1828 }
 0x503   :  { %v1103_v9 = vmul.f32 %v1829_v8, %v1827_v60  }
 0x504 LB: > { %v1111_v11 = vsel %vm1057_vm14, %v1904_v9, 0.0  ;;  %s1109_s20 = sadd.s32 1, %s1908_s20   ;;  %s1908_s20 = sphi %s2240_s20, %s1109_s20   ;;  %v1904_v9 = vphi %v1103_v9, %v2310_v9  }
 0x505   : > { %v1112_v12 = vrot.slane %v1111_v11, 4  ;;  %p1106_p8 = scmp.ge.s32.totalorder %s1109_s20, 25  }
 0x506   :  { %1779 = vmatprep.subr.bf16.mxu1 (%p1106_p8), %v1914_v1  ;;  %1656 = vmatprep.mubr.msk.f32.mxu1 (%p1106_p8), %vm1915_vm1, %v1916_v10 }
 0x507   : > { %v1113_v13 = vadd.f32 %v1112_v12, %v1111_v11 }
 0x509   : > { %v1114_v14 = vrot.slane %v1113_v13, 2 }
 0x50b   : > { %v1115_v15 = vadd.f32 %v1114_v14, %v1113_v13 }
 0x50d   : > { %v1116_v16 = vrot.slane %v1115_v15, 1 }
 0x50f   : > { %v1117_v17 = vadd.f32 %v1116_v16, %v1115_v15 }
 0x511   : > { %v1118_v18 = vmax.f32 %v1117_v17, 1e-05 }
 0x513   : > { %1830 = vrcp.f32 %v1118_v18 }
 0x51d   : > { %v1831_v19 = vpop.eup %1830 }
 0x51e   : > { %v1120_v20 = vmul.f32 0.1, %v1831_v19 }
 0x520   : > { %v1121_v21 = vmul.f32 %v1904_v9, %v1120_v20 }
 0x522   : > { %v1122_v22 = vsel %vm1057_vm14, %v1121_v21, 0.0 }
 0x523   : > { %v1123_v23 = vrot.slane %v1122_v22, 4 }
 0x525   : > { %v1124_v24 = vadd.f32 %v1123_v23, %v1122_v22 }
 0x527   : > { %v1125_v25 = vrot.slane %v1124_v24, 2 }
 0x529   : > { %v1126_v26 = vadd.f32 %v1125_v25, %v1124_v24 }
 0x52b   : > { %v1127_v27 = vrot.slane %v1126_v26, 1 }
 0x52d   : > { %v1128_v28 = vadd.f32 %v1127_v27, %v1126_v26 }
 0x52f   : > { %v1129_v29 = vsel %vm322_vm8, %v1128_v28, 0.0 }
 0x530   : > { %1130 = vadd.xlane.f32.xlu0 %v1129_v29 }
 0x5bd   : > { %v1131_v30 = vpop.xlane.xlu0 %1130 }
 0x5be   : > { %v1132_v31 = vmax.f32 %v1131_v30, 1e-05 }
 0x5c0   : > { %1832 = vrcp.f32 %v1132_v31 }
 0x5ca   : > { %v1833_v32 = vpop.eup %1832 }
 0x5cb   : > { %v1134_v33 = vmul.f32 0.5, %v1833_v32 }
 0x5cd   : > { %v1135_v34 = vmul.f32 %v1134_v33, %v1121_v21 }
 0x5cf   : > { %v1136_v35 = vsel %vm1057_vm14, %v1135_v34, 0.0 }
 0x5d0   : > { %v1137_v36 = vrot.slane %v1136_v35, 4 }
 0x5d2   : > { %v1138_v37 = vadd.f32 %v1137_v36, %v1136_v35 }
 0x5d4   : > { %v1139_v38 = vrot.slane %v1138_v37, 2 }
 0x5d6   : > { %v1140_v40 = vadd.f32 %v1139_v38, %v1138_v37 }
 0x5d8   : > { %v1141_v42 = vrot.slane %v1140_v40, 1 }
 0x5da   : > { %v1142_v43 = vadd.f32 %v1141_v42, %v1140_v40 }
 0x5dc   : > { %v1143_v44 = vmax.f32 %v1142_v43, 1e-05 }
 0x5de   : > { %1834 = vrcp.f32 %v1143_v44 }
 0x5e8   : > { %v1835_v45 = vpop.eup %1834 }
 0x5e9   : > { %v1145_v46 = vmul.f32 0.1, %v1835_v45 }
 0x5eb   : > { %v1146_v47 = vmul.f32 %v1145_v46, %v1135_v34 }
 0x5ed   : > { %v1147_v48 = vsel %vm1057_vm14, %v1146_v47, 0.0 }
 0x5ee   : > { %v1148_v49 = vrot.slane %v1147_v48, 4 }
 0x5f0   : > { %v1149_v50 = vadd.f32 %v1148_v49, %v1147_v48 }
 0x5f2   : > { %v1150_v51 = vrot.slane %v1149_v50, 2 }
 0x5f4   : > { %v1151_v52 = vadd.f32 %v1150_v51, %v1149_v50 }
 0x5f6   : > { %v1152_v53 = vrot.slane %v1151_v52, 1 }
 0x5f8   : > { %v1153_v54 = vadd.f32 %v1152_v53, %v1151_v52 }
 0x5fa   : > { %v1154_v55 = vsel %vm322_vm8, %v1153_v54, 0.0 }
 0x5fb   : > { %1155 = vadd.xlane.f32.xlu0 %v1154_v55 }
 0x688   : > { %v1156_v56 = vpop.xlane.xlu0 %1155 }
 0x689   : > { %v1157_v57 = vmax.f32 %v1156_v56, 1e-05 }
 0x68b   : > { %1836 = vrcp.f32 %v1157_v57 }
 0x695   : > { %v1837_v58 = vpop.eup %1836 }
 0x696   : > { %v1159_v59 = vmul.f32 0.5, %v1837_v58 }
 0x698   : > { %v1160_v60 = vmul.f32 %v1159_v59, %v1146_v47  ;;  %v1235_v59 = vld [vmem:[%s2303_s8] sm:$0xff] (%p1106_p8) }
 0x69a   : > { %v1161_v61 = vsel %vm1057_vm14, %v1160_v60, 0.0 }
 0x69b   : > { %v1162_v62 = vrot.slane %v1161_v61, 4 }
 0x69d   : > { %v1163_v63 = vadd.f32 %v1162_v62, %v1161_v61 }
 0x69f   : > { %v1164_v0 = vrot.slane %v1163_v63, 2 }
 0x6a1   : > { %v1165_v2 = vadd.f32 %v1164_v0, %v1163_v63 }
 0x6a3   : > { %v1166_v3 = vrot.slane %v1165_v2, 1 }
 0x6a5   : > { %v1167_v4 = vadd.f32 %v1166_v3, %v1165_v2 }
 0x6a7   : > { %v1168_v5 = vmax.f32 %v1167_v4, 1e-05 }
 0x6a9   : > { %1838 = vrcp.f32 %v1168_v5 }
 0x6b3   : > { %v1839_v6 = vpop.eup %1838 }
 0x6b4   : > { %v1170_v7 = vmul.f32 0.1, %v1839_v6 }
 0x6b6   : > { %v1171_v8 = vmul.f32 %v1170_v7, %v1160_v60  ;;  %v1236_v60 = vld [vmem:[%s2303_s8 + $0x8] sm:$0x3] (%p1106_p8)  ;;  %s1918_s8 = smov (%p1106_p8), [#allocation5]  }
 0x6b7   :  { %v1780_v61 = vpack.c.bf16 (%p1106_p8), %v1236_v60, %v1235_v59  ;;  %s1326_s25 = sshll.u32 (%p1106_p8), %s1918_s8, 4  ;;  %s1327_s25 = int_to_ptr.vmem [resolvable:$true] %s1326_s25 }
 0x6b8   : > { %v1172_v9 = vsel %vm1057_vm14, %v1171_v8, 0.0  ;;  %s1868_s5 = scalar_lea.vmem (%p1106_p8), %s1327_s25, 32  ;;  %p1873_p10 = scmp.lt.s32.totalorder (%p1106_p8), %s1327_s25, %s1327_s25 }
 0x6b9   : > { %v1173_v11 = vrot.slane %v1172_v9, 4  ;;  %1782 = vmatpush3.bf16.msk.msra.mxu1 (%p1106_p8), %vm2058_vm4, %v1780_v61  ;;  %p1869_p9 = scmp.ne.s32.totalorder (%p1106_p8), %s1327_s25, %s1868_s5  ;;  %p1874_p11 = scmp.lt.s32.totalorder (%p1106_p8), %s1868_s5, %s1868_s5 }
 0x6bb   : > { %v1174_v12 = vadd.f32 %v1173_v11, %v1172_v9  ;;  %p1875_p12 = por (%p1106_p8), %p1874_p11, %p1873_p10 }
 0x6bd   : > { %v1175_v13 = vrot.slane %v1174_v12, 2  ;;  %p1876_p13 = pnand (%p1106_p8), %p1875_p12, %p1869_p9 }
 0x6bf   : > { %v1176_v14 = vadd.f32 %v1175_v13, %v1174_v12 }
 0x6c1   : > { %v1177_v15 = vrot.slane %v1176_v14, 1 }
 0x6c3   : > { %v1178_v16 = vadd.f32 %v1177_v15, %v1176_v14 }
 0x6c5   : > { %v1179_v17 = vsel %vm322_vm8, %v1178_v16, 0.0 }
 0x6c6   : > { %1180 = vadd.xlane.f32.xlu1 %v1179_v17 }
 0x753   : > { %v1181_v18 = vpop.xlane.xlu1 %1180 }
 0x754   : > { %v1182_v19 = vmax.f32 %v1181_v18, 1e-05 }
 0x756   : > { %1840 = vrcp.f32 %v1182_v19 }
 0x760   : > { %v1841_v20 = vpop.eup %1840 }
 0x761   : > { %v1184_v21 = vmul.f32 0.5, %v1841_v20 }
 0x763   : > { %v1185_v22 = vmul.f32 %v1184_v21, %v1171_v8 }
 0x765   : > { %v1186_v23 = vsel %vm1057_vm14, %v1185_v22, 0.0 }
 0x766   : > { %v1187_v24 = vrot.slane %v1186_v23, 4 }
 0x768   : > { %v1188_v25 = vadd.f32 %v1187_v24, %v1186_v23 }
 0x76a   : > { %v1189_v26 = vrot.slane %v1188_v25, 2 }
 0x76c   : > { %v1190_v27 = vadd.f32 %v1189_v26, %v1188_v25 }
 0x76e   : > { %v1191_v28 = vrot.slane %v1190_v27, 1 }
 0x770   : > { %v1192_v29 = vadd.f32 %v1191_v28, %v1190_v27 }
 0x772   : > { %v1193_v30 = vmax.f32 %v1192_v29, 1e-05 }
 0x774   : > { %1842 = vrcp.f32 %v1193_v30 }
 0x77e   : > { %v1843_v31 = vpop.eup %1842 }
 0x77f   : > { %v1195_v32 = vmul.f32 0.1, %v1843_v31 }
 0x781   : > { %v1196_v33 = vmul.f32 %v1195_v32, %v1185_v22 }
 0x783   : > { %v1197_v34 = vsel %vm1057_vm14, %v1196_v33, 0.0 }
 0x784   : > { %v1198_v35 = vrot.slane %v1197_v34, 4 }
 0x786   : > { %v1199_v36 = vadd.f32 %v1198_v35, %v1197_v34 }
 0x788   : > { %v1200_v37 = vrot.slane %v1199_v36, 2 }
 0x78a   : > { %v1201_v38 = vadd.f32 %v1200_v37, %v1199_v36 }
 0x78c   : > { %v1202_v40 = vrot.slane %v1201_v38, 1 }
 0x78e   : > { %v1203_v42 = vadd.f32 %v1202_v40, %v1201_v38 }
 0x790   : > { %v1204_v43 = vsel %vm322_vm8, %v1203_v42, 0.0 }
 0x791   : > { %1205 = vadd.xlane.f32.xlu1 %v1204_v43 }
 0x81e   : > { %v1206_v44 = vpop.xlane.xlu1 %1205 }
 0x81f   : > { %v1207_v45 = vmax.f32 %v1206_v44, 1e-05 }
 0x821   : > { %1844 = vrcp.f32 %v1207_v45 }
 0x82a   :  { %1108 = sbr.rel (!%p1106_p8) target bundleno = 1284 (0x504), region = 91 }
 0x82b   : > { %v1845_v46 = vpop.eup %1844 }
 0x82c   : > { %v1209_v47 = vmul.f32 0.5, %v1845_v46 }
 0x82e   : > { %v1210_v48 = vmul.f32 %v1209_v47, %v1196_v33  }
 0x830   : > { %v2310_v9 = vmov %v1210_v48  ;;  %v1211_v49 = vmul.f32 (%p1106_p8), 2.0, %v1210_v48 }
 0x832   :  { %v1212_v50 = vsel %vm1057_vm14, %v1211_v49, -inf }
 0x833   :  { %1213 = vmax.xlane.f32.xlu0 %v1212_v50 }
 0x8c0   :  { %v1214_v51 = vpop.xlane.xlu0 %1213 }
 0x8c1   :  { %vm1215_vm15 = vcmp.eq.f32.partialorder %v1211_v49, %v1214_v51 }
 0x8c2   :  { %v1216_v52 = vsel %vm1215_vm15, %v2065_v41, 10 }
 0x8c3   :  { %v1217_v53 = vsel %vm1057_vm14, %v1216_v52, 2147483647 }
 0x8c4   :  { %v1219_v54 = vshra.s32 %v1217_v53, 16  ;;  %v1218_v56 = vand.u32 65535, %v1217_v53 }
 0x8c6   :  { %v1221_v55 = vcvt.s32.f32 %v1219_v54  ;;  %v1220_v58 = vcvt.s32.f32 %v1218_v56 }
 0x8c8   :  { %1222 = vmin.xlane.f32.xlu0 %v1221_v55 }
 0x955   :  { %v1223_v57 = vpop.xlane.xlu0 %1222 }
 0x956   :  { %vm1224_vm0 = vcmp.eq.f32.partialorder %v1221_v55, %v1223_v57  ;;  %v1229_v62 = vcvt.f32.s32 %v1223_v57 }
 0x957   :  { %v1225_v1 = vsel %vm1224_vm0, %v1220_v58, inf }
 0x958   :  { %1226 = vmin.xlane.f32.xlu1 %v1225_v1  ;;  %v1230_v0 = vshll.u32 %v1229_v62, 16 }
 0x9e5   :  { %v1227_v63 = vpop.xlane.xlu1 %1226 }
 0x9e6   :  { %v1228_v2 = vcvt.f32.s32 %v1227_v63 }
 0x9e8   :  { %v1231_v3 = vadd.s32 %v1230_v0, %v1228_v2 }
 0x9ea   :  { %1232 = vst [vmem:[%s2306_s11] sm:$0x3] %v1231_v3  ;;  %vm1233_vm1 = vcmp.eq.s32.totalorder %v1231_v3, %v2065_v41 }
 0x9eb   :  { %v1234_v4 = vsel %vm1233_vm1, 1.0, %v1916_v10 }
 0x9ec   :  { %1657 = vmatmul.mubr.msk.f32.vlgmr.msra.gmra.mrb[12].mxu1 %vm322_vm8, %v1234_v4 }
 0xabf   :  { %v1309_v39 = vpop.f32.mrb[12].mxu1 }
 0xac0   :  { %1313 = vst [vmem:[#allocation5] sm:$0x3] %v1309_v39  ;;  %v1658_v5 = vpop.f32.mrb[13].mxu1 }
 0xac1   :  { %1879 = shalt.err (!%p1876_p13)
}
 0xac2   :  { %s1880_s6 = scalar_lea.hbm %s2307_s12, 32 }
 0xac3   :  { %p1881_p0 = scmp.ne.s32.totalorder %s2307_s12, %s1880_s6  ;;  %p1884_p1 = scmp.lt.u32.totalorder %s1880_s6, %s2307_s12 }
 0xac5   :  { %p1886_p2 = pnand %p1884_p1, %p1881_p0 }
 0xac7   :  { %1889 = shalt.err (!%p1886_p2)
}
 0xac8   :  { %1329 = dma.vmem_to_hbm [thread:$0]  %s1327_s25, 32, %s2307_s12, [#allocation4]  }
 0xac9   :  { %1900 = dma.done.wait [#allocation4], 32  }
 0xaca   :  { %1901 = vsyncadd [#allocation4], 4294967264 }
 0xacb   :  { %1339 = vsyncpa [#allocation3], 1 }
 0xacc   :  { %1340 = vsyncpa [#allocation4], 1 }

</bundles_post_ra>
